<compile_context>
chip_gen: v5e
topology: v5e:2x2
jax: 0.10.0
libtpu: 0.0.40
codegen_flags: <defaults>
</compile_context>

<pallas_src>
import functools

import jax
import jax.numpy as jnp
import numpy as np
from jax import lax
from jax.experimental import pallas as pl
from jax.experimental.pallas import tpu as pltpu

_LANE = 128


def _round_up(n, m):
    return ((n + m - 1) // m) * m


def _sigmoid(x):
    # sigmoid(x) == 0.5 * tanh(0.5 * x) + 0.5 : one EUP push instead of a
    # possible exp + reciprocal pair; mathematically identical.
    return 0.5 * jnp.tanh(0.5 * x) + 0.5


def _bf16_dot(a, b):
    # Single-pass bf16 MXU matmul with f32 accumulation.
    return jnp.dot(a.astype(jnp.bfloat16), b.astype(jnp.bfloat16),
                   preferred_element_type=jnp.float32)


# ---------------------------------------------------------------------------
# Kernel: single invocation, whole problem resident in VMEM.
#   xt_ref     (T, B, D)    f32   time-major input
#   wih_fb_ref (D, 8*Hp)    bf16  [forward | reverse] input->gate weights
#                                 (each gate padded to a full 128-lane tile)
#   whh_ref    (Hp, 4*Hp)   bf16  forward hidden->gate weights
#   bfb_ref    (1, 8*Hp)    f32   [forward | reverse] folded biases (b_ih+b_hh)
#   wdf_ref    (Hp, Op)     bf16  dense head, forward-hidden half
#   wdb_ref    (Hp, Op)     bf16  dense head, reverse-hidden half
#   bd_ref     (1, Op)      f32   dense bias
#   out_ref    (B, Op)      f32   lane-dense output slab
#   xp_ref     (T, B, 4*Hp) f32   scratch: hoisted forward input projection
# Gate order i, f, g, o (PyTorch).  Pad lanes of h/c stay exactly zero and pad
# weight rows/lanes are zero, so real lanes match the unpadded math.
# ---------------------------------------------------------------------------
def bilstm_kernel(xt_ref, wih_fb_ref, whh_ref, bfb_ref, wdf_ref, wdb_ref,
                  bd_ref, out_ref, xp_ref):
    T, B, D = xt_ref.shape
    Hp = whh_ref.shape[0]
    G = 4 * Hp

    def cell(gates, c_prev):
        i = _sigmoid(gates[:, 0 * Hp:1 * Hp])
        f = _sigmoid(gates[:, 1 * Hp:2 * Hp])
        g = jnp.tanh(gates[:, 2 * Hp:3 * Hp])
        o = _sigmoid(gates[:, 3 * Hp:4 * Hp])
        c = f * c_prev + i * g
        h = o * jnp.tanh(c)
        return h, c

    zeros = jnp.zeros((B, Hp), jnp.float32)

    # ---- Phase 1: one hoisted input projection for BOTH directions (+ folded
    # biases) over all T steps.  Forward half is scattered to the (T, B, 4Hp)
    # scratch so each serial step reads a contiguous lane-dense tile. --------
    proj = _bf16_dot(xt_ref[...].reshape(T * B, D), wih_fb_ref[...]) + bfb_ref[...]
    for t in range(T):                                  # static, off serial path
        xp_ref[t] = proj[t * B:(t + 1) * B, :G]

    # ---- Phase 2 (independent of the recurrence, hoisted above the loop):
    # the head consumes the reverse direction only at t = T-1, which is exactly
    # ONE reverse cell step from zero state on x[:, T-1, :]. ------------------
    h_bwd, _ = cell(proj[(T - 1) * B:T * B, G:], zeros)
    tail = _bf16_dot(h_bwd, wdb_ref[...]) + bd_ref[...]

    # ---- Phase 3: serial forward recurrence - one (B,Hp)@(Hp,4Hp) bf16 MXU
    # matmul per step; W_hh loaded once outside the loop. ---------------------
    whh = whh_ref[...]

    def step(t, carry):
        h, c = carry
        gates = xp_ref[t] + _bf16_dot(h, whh)
        return cell(gates, c)

    h_fwd, _ = lax.fori_loop(0, T, step, (zeros, zeros),
                             unroll=(T if T <= 8 else 8))

    # ---- Phase 4: dropout(eval) = identity; dense head; lane-dense output. --
    out_ref[...] = tail + _bf16_dot(h_fwd, wdf_ref[...])


# ---------------------------------------------------------------------------
# Model-load-time layout prep + jitted forward.
# PyTorch layouts: w_ih_*: (4H, D), w_hh_*: (4H, H), b_*: (4H,),
#                  w_d: (O, 2H), b_d: (O,).
# ---------------------------------------------------------------------------
def make_bilstm_forward(w_ih_f, w_hh_f, b_ih_f, b_hh_f,
                        w_ih_b, w_hh_b, b_ih_b, b_hh_b, w_d, b_d):
    # GUARD: dropping w_hh_b is valid ONLY because the head consumes
    # output[:, -1, :], where the reverse hidden is exactly one cell step from
    # zero state.  If the module ever uses the full sequence or h_n, the
    # reverse recurrence (and w_hh_b) must be added back.
    del w_hh_b
    D = w_ih_f.shape[1]
    H = w_hh_f.shape[1]
    O = w_d.shape[0]
    Hp = _round_up(H, _LANE)
    Op = _round_up(O, _LANE)

    def gate_weights(w, rows, rows_p):
        # (4H, rows) -> right-multiply (rows_p, 4*Hp) bf16; each gate padded to
        # a full 128-lane tile; pad rows/lanes are zero.
        wt = jnp.asarray(w, jnp.float32).T.reshape(rows, 4, H)
        wt = jnp.pad(wt, ((0, rows_p - rows), (0, 0), (0, Hp - H)))
        return wt.reshape(rows_p, 4 * Hp).astype(jnp.bfloat16)

    def gate_bias(b_ih, b_hh):
        b = (jnp.asarray(b_ih, jnp.float32)
             + jnp.asarray(b_hh, jnp.float32)).reshape(4, H)
        return jnp.pad(b, ((0, 0), (0, Hp - H))).reshape(1, 4 * Hp)

    # Fold both directions' input projections / biases into single operands.
    wih_fb = jnp.concatenate([gate_weights(w_ih_f, D, D),
                              gate_weights(w_ih_b, D, D)], axis=1)   # (D, 8Hp)
    whh_f = gate_weights(w_hh_f, H, Hp)                              # (Hp, 4Hp)
    bfb = jnp.concatenate([gate_bias(b_ih_f, b_hh_f),
                           gate_bias(b_ih_b, b_hh_b)], axis=1)       # (1, 8Hp)

    w_d32 = jnp.asarray(w_d, jnp.float32)
    wdf = jnp.pad(w_d32[:, :H].T, ((0, Hp - H), (0, Op - O))).astype(jnp.bfloat16)
    wdb = jnp.pad(w_d32[:, H:].T, ((0, Hp - H), (0, Op - O))).astype(jnp.bfloat16)
    bd = jnp.pad(jnp.asarray(b_d, jnp.float32), (0, Op - O)).reshape(1, Op)

    @jax.jit
    def forward(x, aux=None):
        del aux  # unused by the module's forward
        x = x.astype(jnp.float32)
        B, T, _ = x.shape
        # Time-major copy (few KB, done by XLA, off the serial path) so each
        # per-step projection tile is contiguous inside the kernel.
        xt = jnp.transpose(x, (1, 0, 2))                 # (T, B, D)
        out_padded = pl.pallas_call(
            bilstm_kernel,
            out_shape=jax.ShapeDtypeStruct((B, Op), jnp.float32),
            in_specs=[pl.BlockSpec(memory_space=pltpu.MemorySpace.VMEM)] * 7,
            out_specs=pl.BlockSpec(memory_space=pltpu.MemorySpace.VMEM),
            scratch_shapes=[pltpu.VMEM((T, B, 4 * Hp), jnp.float32)],
            # VMEM guard: full x + (T,B,4Hp) scratch must fit the scoped VMEM
            # limit (16 MiB default on v5e, 32 MiB on v6e/v7x).  At these
            # shapes usage is <1 MiB; if B*T or H scale, tile T via a grid
            # axis and/or set pltpu.CompilerParams(vmem_limit_bytes=...).
            # For large B on v7x, add a batch grid with
            # dimension_semantics=("parallel",) to use both TensorCores.
        )(xt, wih_fb, whh_f, bfb, wdf, wdb, bd)
        return out_padded[:, :O]

    return forward


# ---------------------------------------------------------------------------
# Pure-JAX reference with literal PyTorch bidirectional-LSTM semantics
# (full forward + full reverse scans, concat, take last step, dense).
# matmul_dtype=bfloat16 mirrors the kernel's single-pass MXU precision.
# ---------------------------------------------------------------------------
def reference_forward(x, w_ih_f, w_hh_f, b_ih_f, b_hh_f,
                      w_ih_b, w_hh_b, b_ih_b, b_hh_b, w_d, b_d,
                      matmul_dtype=jnp.float32,
                      precision=jax.lax.Precision.HIGHEST):
    x = x.astype(jnp.float32)
    B, T, D = x.shape
    H = w_hh_f.shape[1]
    md = matmul_dtype
    dot = functools.partial(jnp.dot, preferred_element_type=jnp.float32,
                            precision=precision)

    def run(w_ih, w_hh, b_ih, b_hh, xs):
        w_ih_t = jnp.asarray(w_ih, jnp.float32).T.astype(md)
        w_hh_t = jnp.asarray(w_hh, jnp.float32).T.astype(md)
        b = (b_ih + b_hh).astype(jnp.float32)

        def step(carry, x_t):
            h, c = carry
            gates = (dot(x_t.astype(md), w_ih_t) + b) + dot(h.astype(md), w_hh_t)
            i = _sigmoid(gates[:, 0 * H:1 * H])
            f = _sigmoid(gates[:, 1 * H:2 * H])
            g = jnp.tanh(gates[:, 2 * H:3 * H])
            o = _sigmoid(gates[:, 3 * H:4 * H])
            c = f * c + i * g
            h = o * jnp.tanh(c)
            return (h, c), h

        init = (jnp.zeros((B, H), jnp.float32), jnp.zeros((B, H), jnp.float32))
        _, hs = lax.scan(step, init, xs)
        return hs                                        # (T, B, H)

    xs = jnp.transpose(x, (1, 0, 2))                     # (T, B, D)
    hs_f = run(w_ih_f, w_hh_f, b_ih_f, b_hh_f, xs)
    hs_b = run(w_ih_b, w_hh_b, b_ih_b, b_hh_b, xs[::-1])[::-1]
    last = jnp.concatenate([hs_f[-1], hs_b[-1]], axis=-1)   # == output[:, -1, :]
    wd = jnp.asarray(w_d, jnp.float32).T.astype(md)
    return dot(last.astype(md), wd) + jnp.asarray(b_d, jnp.float32)


if __name__ == "__main__":
    # Small shapes consistent with the module's forward.
    B, T, D, H, O = 2, 8, 16, 32, 4

    key = jax.random.PRNGKey(0)
    ks = jax.random.split(key, 12)
    k = 1.0 / np.sqrt(H)
    u = lambda kk, shape: jax.random.uniform(kk, shape, jnp.float32, -k, k)

    # PyTorch-style parameters (forward + reverse directions + dense head).
    w_ih_f = u(ks[0], (4 * H, D)); w_hh_f = u(ks[1], (4 * H, H))
    b_ih_f = u(ks[2], (4 * H,));   b_hh_f = u(ks[3], (4 * H,))
    w_ih_b = u(ks[4], (4 * H, D)); w_hh_b = u(ks[5], (4 * H, H))
    b_ih_b = u(ks[6], (4 * H,));   b_hh_b = u(ks[7], (4 * H,))
    w_d = u(ks[8], (O, 2 * H));    b_d = u(ks[9], (O,))

    x = jax.random.normal(ks[10], (B, T, D), jnp.float32)
    aux = jax.random.normal(ks[11], (B, T, D), jnp.float32)  # unused by forward

    forward = make_bilstm_forward(w_ih_f, w_hh_f, b_ih_f, b_hh_f,
                                  w_ih_b, w_hh_b, b_ih_b, b_hh_b, w_d, b_d)
    out = jax.block_until_ready(forward(x, aux))

    # Precision-matched reference (bf16 MXU operands, f32 accumulation).
    ref_bf16 = reference_forward(x, w_ih_f, w_hh_f, b_ih_f, b_hh_f,
                                 w_ih_b, w_hh_b, b_ih_b, b_hh_b, w_d, b_d,
                                 matmul_dtype=jnp.bfloat16,
                                 precision=jax.lax.Precision.DEFAULT)
    np.testing.assert_allclose(np.asarray(out), np.asarray(ref_bf16),
                               rtol=5e-3, atol=5e-3)

    # Full-f32 reference (PyTorch-like math) at a tolerance consistent with
    # the kernel's single-pass bf16 matmuls on bounded LSTM activations.
    ref_f32 = reference_forward(x, w_ih_f, w_hh_f, b_ih_f, b_hh_f,
                                w_ih_b, w_hh_b, b_ih_b, b_hh_b, w_d, b_d,
                                matmul_dtype=jnp.float32,
                                precision=jax.lax.Precision.HIGHEST)
    np.testing.assert_allclose(np.asarray(out), np.asarray(ref_f32),
                               rtol=2.5e-2, atol=2.5e-2)

    print("KERNEL_OK")
</pallas_src>

<mosaic_0001>
module attributes {stable_mosaic.version = 11 : i64} {
  func.func @bilstm_kernel(%arg0: memref<8x2x16xf32, #tpu.memory_space<vmem>>, %arg1: memref<16x1024xbf16, #tpu.memory_space<vmem>>, %arg2: memref<128x512xbf16, #tpu.memory_space<vmem>>, %arg3: memref<1x1024xf32, #tpu.memory_space<vmem>>, %arg4: memref<128x128xbf16, #tpu.memory_space<vmem>>, %arg5: memref<128x128xbf16, #tpu.memory_space<vmem>>, %arg6: memref<1x128xf32, #tpu.memory_space<vmem>>, %arg7: memref<2x128xf32, #tpu.memory_space<vmem>>, %arg8: memref<8x2x512xf32, #tpu.memory_space<vmem>>) attributes {dimension_semantics = [], scalar_prefetch = 0 : i64, scratch_operands = 1 : i64, tpu.core_type = #tpu.core_type<tc>} {
    %cst = arith.constant 0.000000e+00 : f32
    %0 = vector.broadcast %cst : f32 to vector<2x128xf32>
    %c0 = arith.constant 0 : index
    %c0_0 = arith.constant 0 : index
    %c0_1 = arith.constant 0 : index
    %1 = vector.load %arg0[%c0, %c0_0, %c0_1] : memref<8x2x16xf32, #tpu.memory_space<vmem>>, vector<8x2x16xf32>
    %2 = vector.shape_cast %1 : vector<8x2x16xf32> to vector<16x16xf32>
    %c0_2 = arith.constant 0 : index
    %c0_3 = arith.constant 0 : index
    %3 = vector.load %arg1[%c0_2, %c0_3] : memref<16x1024xbf16, #tpu.memory_space<vmem>>, vector<16x1024xbf16>
    %4 = arith.truncf %2 : vector<16x16xf32> to vector<16x16xbf16>
    %cst_4 = arith.constant dense<0.000000e+00> : vector<16x1024xf32>
    %5 = tpu.matmul %4, %3, %cst_4 {dimension_numbers = #tpu.dot_dimension_numbers<[1], [0], [0], [1], [0, 0, 1, 1], [], []>} : vector<16x16xbf16>, vector<16x1024xbf16>, vector<16x1024xf32> -> vector<16x1024xf32>
    %c0_5 = arith.constant 0 : index
    %c0_6 = arith.constant 0 : index
    %6 = vector.load %arg3[%c0_5, %c0_6] : memref<1x1024xf32, #tpu.memory_space<vmem>>, vector<1x1024xf32>
    %7 = vector.broadcast %6 : vector<1x1024xf32> to vector<16x1024xf32>
    %8 = arith.addf %5, %7 : vector<16x1024xf32>
    %9 = vector.extract_strided_slice %8 {offsets = [0, 0], sizes = [2, 512], strides = [1, 1]} : vector<16x1024xf32> to vector<2x512xf32>
    %c0_7 = arith.constant 0 : index
    %c0_8 = arith.constant 0 : index
    %c0_9 = arith.constant 0 : index
    %10 = vector.load %arg8[%c0_7, %c0_8, %c0_9] : memref<8x2x512xf32, #tpu.memory_space<vmem>>, vector<1x2x512xf32>
    %11 = vector.shape_cast %10 : vector<1x2x512xf32> to vector<2x512xf32>
    %12 = vector.shape_cast %9 : vector<2x512xf32> to vector<1x2x512xf32>
    tpu.vector_store %arg8[%c0_7, %c0_8, %c0_9], %12 {strides = array<i32>} : memref<8x2x512xf32, #tpu.memory_space<vmem>>, vector<1x2x512xf32>,
    %13 = vector.extract_strided_slice %8 {offsets = [2, 0], sizes = [2, 512], strides = [1, 1]} : vector<16x1024xf32> to vector<2x512xf32>
    %c1 = arith.constant 1 : index
    %c0_10 = arith.constant 0 : index
    %c0_11 = arith.constant 0 : index
    %14 = vector.load %arg8[%c1, %c0_10, %c0_11] : memref<8x2x512xf32, #tpu.memory_space<vmem>>, vector<1x2x512xf32>
    %15 = vector.shape_cast %14 : vector<1x2x512xf32> to vector<2x512xf32>
    %16 = vector.shape_cast %13 : vector<2x512xf32> to vector<1x2x512xf32>
    tpu.vector_store %arg8[%c1, %c0_10, %c0_11], %16 {strides = array<i32>} : memref<8x2x512xf32, #tpu.memory_space<vmem>>, vector<1x2x512xf32>,
    %17 = vector.extract_strided_slice %8 {offsets = [4, 0], sizes = [2, 512], strides = [1, 1]} : vector<16x1024xf32> to vector<2x512xf32>
    %c2 = arith.constant 2 : index
    %c0_12 = arith.constant 0 : index
    %c0_13 = arith.constant 0 : index
    %18 = vector.load %arg8[%c2, %c0_12, %c0_13] : memref<8x2x512xf32, #tpu.memory_space<vmem>>, vector<1x2x512xf32>
    %19 = vector.shape_cast %18 : vector<1x2x512xf32> to vector<2x512xf32>
    %20 = vector.shape_cast %17 : vector<2x512xf32> to vector<1x2x512xf32>
    tpu.vector_store %arg8[%c2, %c0_12, %c0_13], %20 {strides = array<i32>} : memref<8x2x512xf32, #tpu.memory_space<vmem>>, vector<1x2x512xf32>,
    %21 = vector.extract_strided_slice %8 {offsets = [6, 0], sizes = [2, 512], strides = [1, 1]} : vector<16x1024xf32> to vector<2x512xf32>
    %c3 = arith.constant 3 : index
    %c0_14 = arith.constant 0 : index
    %c0_15 = arith.constant 0 : index
    %22 = vector.load %arg8[%c3, %c0_14, %c0_15] : memref<8x2x512xf32, #tpu.memory_space<vmem>>, vector<1x2x512xf32>
    %23 = vector.shape_cast %22 : vector<1x2x512xf32> to vector<2x512xf32>
    %24 = vector.shape_cast %21 : vector<2x512xf32> to vector<1x2x512xf32>
    tpu.vector_store %arg8[%c3, %c0_14, %c0_15], %24 {strides = array<i32>} : memref<8x2x512xf32, #tpu.memory_space<vmem>>, vector<1x2x512xf32>,
    %25 = vector.extract_strided_slice %8 {offsets = [8, 0], sizes = [2, 512], strides = [1, 1]} : vector<16x1024xf32> to vector<2x512xf32>
    %c4 = arith.constant 4 : index
    %c0_16 = arith.constant 0 : index
    %c0_17 = arith.constant 0 : index
    %26 = vector.load %arg8[%c4, %c0_16, %c0_17] : memref<8x2x512xf32, #tpu.memory_space<vmem>>, vector<1x2x512xf32>
    %27 = vector.shape_cast %26 : vector<1x2x512xf32> to vector<2x512xf32>
    %28 = vector.shape_cast %25 : vector<2x512xf32> to vector<1x2x512xf32>
    tpu.vector_store %arg8[%c4, %c0_16, %c0_17], %28 {strides = array<i32>} : memref<8x2x512xf32, #tpu.memory_space<vmem>>, vector<1x2x512xf32>,
    %29 = vector.extract_strided_slice %8 {offsets = [10, 0], sizes = [2, 512], strides = [1, 1]} : vector<16x1024xf32> to vector<2x512xf32>
    %c5 = arith.constant 5 : index
    %c0_18 = arith.constant 0 : index
    %c0_19 = arith.constant 0 : index
    %30 = vector.load %arg8[%c5, %c0_18, %c0_19] : memref<8x2x512xf32, #tpu.memory_space<vmem>>, vector<1x2x512xf32>
    %31 = vector.shape_cast %30 : vector<1x2x512xf32> to vector<2x512xf32>
    %32 = vector.shape_cast %29 : vector<2x512xf32> to vector<1x2x512xf32>
    tpu.vector_store %arg8[%c5, %c0_18, %c0_19], %32 {strides = array<i32>} : memref<8x2x512xf32, #tpu.memory_space<vmem>>, vector<1x2x512xf32>,
    %33 = vector.extract_strided_slice %8 {offsets = [12, 0], sizes = [2, 512], strides = [1, 1]} : vector<16x1024xf32> to vector<2x512xf32>
    %c6 = arith.constant 6 : index
    %c0_20 = arith.constant 0 : index
    %c0_21 = arith.constant 0 : index
    %34 = vector.load %arg8[%c6, %c0_20, %c0_21] : memref<8x2x512xf32, #tpu.memory_space<vmem>>, vector<1x2x512xf32>
    %35 = vector.shape_cast %34 : vector<1x2x512xf32> to vector<2x512xf32>
    %36 = vector.shape_cast %33 : vector<2x512xf32> to vector<1x2x512xf32>
    tpu.vector_store %arg8[%c6, %c0_20, %c0_21], %36 {strides = array<i32>} : memref<8x2x512xf32, #tpu.memory_space<vmem>>, vector<1x2x512xf32>,
    %37 = vector.extract_strided_slice %8 {offsets = [14, 0], sizes = [2, 512], strides = [1, 1]} : vector<16x1024xf32> to vector<2x512xf32>
    %c7 = arith.constant 7 : index
    %c0_22 = arith.constant 0 : index
    %c0_23 = arith.constant 0 : index
    %38 = vector.load %arg8[%c7, %c0_22, %c0_23] : memref<8x2x512xf32, #tpu.memory_space<vmem>>, vector<1x2x512xf32>
    %39 = vector.shape_cast %38 : vector<1x2x512xf32> to vector<2x512xf32>
    %40 = vector.shape_cast %37 : vector<2x512xf32> to vector<1x2x512xf32>
    tpu.vector_store %arg8[%c7, %c0_22, %c0_23], %40 {strides = array<i32>} : memref<8x2x512xf32, #tpu.memory_space<vmem>>, vector<1x2x512xf32>,
    %41 = vector.extract_strided_slice %8 {offsets = [14, 512], sizes = [2, 512], strides = [1, 1]} : vector<16x1024xf32> to vector<2x512xf32>
    %42 = vector.extract_strided_slice %41 {offsets = [0, 0], sizes = [2, 128], strides = [1, 1]} : vector<2x512xf32> to vector<2x128xf32>
    %cst_24 = arith.constant 5.000000e-01 : f32
    %43 = vector.broadcast %cst_24 : f32 to vector<2x128xf32>
    %44 = arith.mulf %43, %42 : vector<2x128xf32>
    %45 = math.tanh %44 : vector<2x128xf32>
    %cst_25 = arith.constant 5.000000e-01 : f32
    %46 = vector.broadcast %cst_25 : f32 to vector<2x128xf32>
    %47 = arith.mulf %46, %45 : vector<2x128xf32>
    %cst_26 = arith.constant 5.000000e-01 : f32
    %48 = vector.broadcast %cst_26 : f32 to vector<2x128xf32>
    %49 = arith.addf %47, %48 : vector<2x128xf32>
    %50 = vector.extract_strided_slice %41 {offsets = [0, 128], sizes = [2, 128], strides = [1, 1]} : vector<2x512xf32> to vector<2x128xf32>
    %cst_27 = arith.constant 5.000000e-01 : f32
    %51 = vector.broadcast %cst_27 : f32 to vector<2x128xf32>
    %52 = arith.mulf %51, %50 : vector<2x128xf32>
    %53 = math.tanh %52 : vector<2x128xf32>
    %cst_28 = arith.constant 5.000000e-01 : f32
    %54 = vector.broadcast %cst_28 : f32 to vector<2x128xf32>
    %55 = arith.mulf %54, %53 : vector<2x128xf32>
    %cst_29 = arith.constant 5.000000e-01 : f32
    %56 = vector.broadcast %cst_29 : f32 to vector<2x128xf32>
    %57 = arith.addf %55, %56 : vector<2x128xf32>
    %58 = vector.extract_strided_slice %41 {offsets = [0, 256], sizes = [2, 128], strides = [1, 1]} : vector<2x512xf32> to vector<2x128xf32>
    %59 = math.tanh %58 : vector<2x128xf32>
    %60 = vector.extract_strided_slice %41 {offsets = [0, 384], sizes = [2, 128], strides = [1, 1]} : vector<2x512xf32> to vector<2x128xf32>
    %cst_30 = arith.constant 5.000000e-01 : f32
    %61 = vector.broadcast %cst_30 : f32 to vector<2x128xf32>
    %62 = arith.mulf %61, %60 : vector<2x128xf32>
    %63 = math.tanh %62 : vector<2x128xf32>
    %cst_31 = arith.constant 5.000000e-01 : f32
    %64 = vector.broadcast %cst_31 : f32 to vector<2x128xf32>
    %65 = arith.mulf %64, %63 : vector<2x128xf32>
    %cst_32 = arith.constant 5.000000e-01 : f32
    %66 = vector.broadcast %cst_32 : f32 to vector<2x128xf32>
    %67 = arith.addf %65, %66 : vector<2x128xf32>
    %68 = arith.mulf %57, %0 : vector<2x128xf32>
    %69 = arith.mulf %49, %59 : vector<2x128xf32>
    %70 = arith.addf %68, %69 : vector<2x128xf32>
    %71 = math.tanh %70 : vector<2x128xf32>
    %72 = arith.mulf %67, %71 : vector<2x128xf32>
    %c0_33 = arith.constant 0 : index
    %c0_34 = arith.constant 0 : index
    %73 = vector.load %arg5[%c0_33, %c0_34] : memref<128x128xbf16, #tpu.memory_space<vmem>>, vector<128x128xbf16>
    %74 = arith.truncf %72 : vector<2x128xf32> to vector<2x128xbf16>
    %cst_35 = arith.constant dense<0.000000e+00> : vector<2x128xf32>
    %75 = tpu.matmul %74, %73, %cst_35 {dimension_numbers = #tpu.dot_dimension_numbers<[1], [0], [0], [1], [0, 0, 1, 1], [], []>} : vector<2x128xbf16>, vector<128x128xbf16>, vector<2x128xf32> -> vector<2x128xf32>
    %c0_36 = arith.constant 0 : index
    %c0_37 = arith.constant 0 : index
    %76 = vector.load %arg6[%c0_36, %c0_37] : memref<1x128xf32, #tpu.memory_space<vmem>>, vector<1x128xf32>
    %77 = vector.broadcast %76 : vector<1x128xf32> to vector<2x128xf32>
    %78 = arith.addf %75, %77 : vector<2x128xf32>
    %c0_38 = arith.constant 0 : index
    %c0_39 = arith.constant 0 : index
    %79 = vector.load %arg2[%c0_38, %c0_39] : memref<128x512xbf16, #tpu.memory_space<vmem>>, vector<128x512xbf16>
    %c0_i32 = arith.constant 0 : i32
    %80 = arith.index_cast %c0_i32 : i32 to index
    %c0_40 = arith.constant 0 : index
    %c0_41 = arith.constant 0 : index
    %81 = vector.load %arg8[%80, %c0_40, %c0_41] : memref<8x2x512xf32, #tpu.memory_space<vmem>>, vector<1x2x512xf32>
    %82 = vector.shape_cast %81 : vector<1x2x512xf32> to vector<2x512xf32>
    %83 = arith.truncf %0 : vector<2x128xf32> to vector<2x128xbf16>
    %cst_42 = arith.constant dense<0.000000e+00> : vector<2x512xf32>
    %84 = tpu.matmul %83, %79, %cst_42 {dimension_numbers = #tpu.dot_dimension_numbers<[1], [0], [0], [1], [0, 0, 1, 1], [], []>} : vector<2x128xbf16>, vector<128x512xbf16>, vector<2x512xf32> -> vector<2x512xf32>
    %85 = arith.addf %82, %84 : vector<2x512xf32>
    %86 = vector.extract_strided_slice %85 {offsets = [0, 0], sizes = [2, 128], strides = [1, 1]} : vector<2x512xf32> to vector<2x128xf32>
    %cst_43 = arith.constant 5.000000e-01 : f32
    %87 = vector.broadcast %cst_43 : f32 to vector<2x128xf32>
    %88 = arith.mulf %87, %86 : vector<2x128xf32>
    %89 = math.tanh %88 : vector<2x128xf32>
    %cst_44 = arith.constant 5.000000e-01 : f32
    %90 = vector.broadcast %cst_44 : f32 to vector<2x128xf32>
    %91 = arith.mulf %90, %89 : vector<2x128xf32>
    %cst_45 = arith.constant 5.000000e-01 : f32
    %92 = vector.broadcast %cst_45 : f32 to vector<2x128xf32>
    %93 = arith.addf %91, %92 : vector<2x128xf32>
    %94 = vector.extract_strided_slice %85 {offsets = [0, 128], sizes = [2, 128], strides = [1, 1]} : vector<2x512xf32> to vector<2x128xf32>
    %cst_46 = arith.constant 5.000000e-01 : f32
    %95 = vector.broadcast %cst_46 : f32 to vector<2x128xf32>
    %96 = arith.mulf %95, %94 : vector<2x128xf32>
    %97 = math.tanh %96 : vector<2x128xf32>
    %cst_47 = arith.constant 5.000000e-01 : f32
    %98 = vector.broadcast %cst_47 : f32 to vector<2x128xf32>
    %99 = arith.mulf %98, %97 : vector<2x128xf32>
    %cst_48 = arith.constant 5.000000e-01 : f32
    %100 = vector.broadcast %cst_48 : f32 to vector<2x128xf32>
    %101 = arith.addf %99, %100 : vector<2x128xf32>
    %102 = vector.extract_strided_slice %85 {offsets = [0, 256], sizes = [2, 128], strides = [1, 1]} : vector<2x512xf32> to vector<2x128xf32>
    %103 = math.tanh %102 : vector<2x128xf32>
    %104 = vector.extract_strided_slice %85 {offsets = [0, 384], sizes = [2, 128], strides = [1, 1]} : vector<2x512xf32> to vector<2x128xf32>
    %cst_49 = arith.constant 5.000000e-01 : f32
    %105 = vector.broadcast %cst_49 : f32 to vector<2x128xf32>
    %106 = arith.mulf %105, %104 : vector<2x128xf32>
    %107 = math.tanh %106 : vector<2x128xf32>
    %cst_50 = arith.constant 5.000000e-01 : f32
    %108 = vector.broadcast %cst_50 : f32 to vector<2x128xf32>
    %109 = arith.mulf %108, %107 : vector<2x128xf32>
    %cst_51 = arith.constant 5.000000e-01 : f32
    %110 = vector.broadcast %cst_51 : f32 to vector<2x128xf32>
    %111 = arith.addf %109, %110 : vector<2x128xf32>
    %112 = arith.mulf %101, %0 : vector<2x128xf32>
    %113 = arith.mulf %93, %103 : vector<2x128xf32>
    %114 = arith.addf %112, %113 : vector<2x128xf32>
    %115 = math.tanh %114 : vector<2x128xf32>
    %116 = arith.mulf %111, %115 : vector<2x128xf32>
    %c1_i32 = arith.constant 1 : i32
    %117 = arith.index_cast %c1_i32 : i32 to index
    %c0_52 = arith.constant 0 : index
    %c0_53 = arith.constant 0 : index
    %118 = vector.load %arg8[%117, %c0_52, %c0_53] : memref<8x2x512xf32, #tpu.memory_space<vmem>>, vector<1x2x512xf32>
    %119 = vector.shape_cast %118 : vector<1x2x512xf32> to vector<2x512xf32>
    %120 = arith.truncf %116 : vector<2x128xf32> to vector<2x128xbf16>
    %cst_54 = arith.constant dense<0.000000e+00> : vector<2x512xf32>
    %121 = tpu.matmul %120, %79, %cst_54 {dimension_numbers = #tpu.dot_dimension_numbers<[1], [0], [0], [1], [0, 0, 1, 1], [], []>} : vector<2x128xbf16>, vector<128x512xbf16>, vector<2x512xf32> -> vector<2x512xf32>
    %122 = arith.addf %119, %121 : vector<2x512xf32>
    %123 = vector.extract_strided_slice %122 {offsets = [0, 0], sizes = [2, 128], strides = [1, 1]} : vector<2x512xf32> to vector<2x128xf32>
    %cst_55 = arith.constant 5.000000e-01 : f32
    %124 = vector.broadcast %cst_55 : f32 to vector<2x128xf32>
    %125 = arith.mulf %124, %123 : vector<2x128xf32>
    %126 = math.tanh %125 : vector<2x128xf32>
    %cst_56 = arith.constant 5.000000e-01 : f32
    %127 = vector.broadcast %cst_56 : f32 to vector<2x128xf32>
    %128 = arith.mulf %127, %126 : vector<2x128xf32>
    %cst_57 = arith.constant 5.000000e-01 : f32
    %129 = vector.broadcast %cst_57 : f32 to vector<2x128xf32>
    %130 = arith.addf %128, %129 : vector<2x128xf32>
    %131 = vector.extract_strided_slice %122 {offsets = [0, 128], sizes = [2, 128], strides = [1, 1]} : vector<2x512xf32> to vector<2x128xf32>
    %cst_58 = arith.constant 5.000000e-01 : f32
    %132 = vector.broadcast %cst_58 : f32 to vector<2x128xf32>
    %133 = arith.mulf %132, %131 : vector<2x128xf32>
    %134 = math.tanh %133 : vector<2x128xf32>
    %cst_59 = arith.constant 5.000000e-01 : f32
    %135 = vector.broadcast %cst_59 : f32 to vector<2x128xf32>
    %136 = arith.mulf %135, %134 : vector<2x128xf32>
    %cst_60 = arith.constant 5.000000e-01 : f32
    %137 = vector.broadcast %cst_60 : f32 to vector<2x128xf32>
    %138 = arith.addf %136, %137 : vector<2x128xf32>
    %139 = vector.extract_strided_slice %122 {offsets = [0, 256], sizes = [2, 128], strides = [1, 1]} : vector<2x512xf32> to vector<2x128xf32>
    %140 = math.tanh %139 : vector<2x128xf32>
    %141 = vector.extract_strided_slice %122 {offsets = [0, 384], sizes = [2, 128], strides = [1, 1]} : vector<2x512xf32> to vector<2x128xf32>
    %cst_61 = arith.constant 5.000000e-01 : f32
    %142 = vector.broadcast %cst_61 : f32 to vector<2x128xf32>
    %143 = arith.mulf %142, %141 : vector<2x128xf32>
    %144 = math.tanh %143 : vector<2x128xf32>
    %cst_62 = arith.constant 5.000000e-01 : f32
    %145 = vector.broadcast %cst_62 : f32 to vector<2x128xf32>
    %146 = arith.mulf %145, %144 : vector<2x128xf32>
    %cst_63 = arith.constant 5.000000e-01 : f32
    %147 = vector.broadcast %cst_63 : f32 to vector<2x128xf32>
    %148 = arith.addf %146, %147 : vector<2x128xf32>
    %149 = arith.mulf %138, %114 : vector<2x128xf32>
    %150 = arith.mulf %130, %140 : vector<2x128xf32>
    %151 = arith.addf %149, %150 : vector<2x128xf32>
    %152 = math.tanh %151 : vector<2x128xf32>
    %153 = arith.mulf %148, %152 : vector<2x128xf32>
    %c2_i32 = arith.constant 2 : i32
    %154 = arith.index_cast %c2_i32 : i32 to index
    %c0_64 = arith.constant 0 : index
    %c0_65 = arith.constant 0 : index
    %155 = vector.load %arg8[%154, %c0_64, %c0_65] : memref<8x2x512xf32, #tpu.memory_space<vmem>>, vector<1x2x512xf32>
    %156 = vector.shape_cast %155 : vector<1x2x512xf32> to vector<2x512xf32>
    %157 = arith.truncf %153 : vector<2x128xf32> to vector<2x128xbf16>
    %cst_66 = arith.constant dense<0.000000e+00> : vector<2x512xf32>
    %158 = tpu.matmul %157, %79, %cst_66 {dimension_numbers = #tpu.dot_dimension_numbers<[1], [0], [0], [1], [0, 0, 1, 1], [], []>} : vector<2x128xbf16>, vector<128x512xbf16>, vector<2x512xf32> -> vector<2x512xf32>
    %159 = arith.addf %156, %158 : vector<2x512xf32>
    %160 = vector.extract_strided_slice %159 {offsets = [0, 0], sizes = [2, 128], strides = [1, 1]} : vector<2x512xf32> to vector<2x128xf32>
    %cst_67 = arith.constant 5.000000e-01 : f32
    %161 = vector.broadcast %cst_67 : f32 to vector<2x128xf32>
    %162 = arith.mulf %161, %160 : vector<2x128xf32>
    %163 = math.tanh %162 : vector<2x128xf32>
    %cst_68 = arith.constant 5.000000e-01 : f32
    %164 = vector.broadcast %cst_68 : f32 to vector<2x128xf32>
    %165 = arith.mulf %164, %163 : vector<2x128xf32>
    %cst_69 = arith.constant 5.000000e-01 : f32
    %166 = vector.broadcast %cst_69 : f32 to vector<2x128xf32>
    %167 = arith.addf %165, %166 : vector<2x128xf32>
    %168 = vector.extract_strided_slice %159 {offsets = [0, 128], sizes = [2, 128], strides = [1, 1]} : vector<2x512xf32> to vector<2x128xf32>
    %cst_70 = arith.constant 5.000000e-01 : f32
    %169 = vector.broadcast %cst_70 : f32 to vector<2x128xf32>
    %170 = arith.mulf %169, %168 : vector<2x128xf32>
    %171 = math.tanh %170 : vector<2x128xf32>
    %cst_71 = arith.constant 5.000000e-01 : f32
    %172 = vector.broadcast %cst_71 : f32 to vector<2x128xf32>
    %173 = arith.mulf %172, %171 : vector<2x128xf32>
    %cst_72 = arith.constant 5.000000e-01 : f32
    %174 = vector.broadcast %cst_72 : f32 to vector<2x128xf32>
    %175 = arith.addf %173, %174 : vector<2x128xf32>
    %176 = vector.extract_strided_slice %159 {offsets = [0, 256], sizes = [2, 128], strides = [1, 1]} : vector<2x512xf32> to vector<2x128xf32>
    %177 = math.tanh %176 : vector<2x128xf32>
    %178 = vector.extract_strided_slice %159 {offsets = [0, 384], sizes = [2, 128], strides = [1, 1]} : vector<2x512xf32> to vector<2x128xf32>
    %cst_73 = arith.constant 5.000000e-01 : f32
    %179 = vector.broadcast %cst_73 : f32 to vector<2x128xf32>
    %180 = arith.mulf %179, %178 : vector<2x128xf32>
    %181 = math.tanh %180 : vector<2x128xf32>
    %cst_74 = arith.constant 5.000000e-01 : f32
    %182 = vector.broadcast %cst_74 : f32 to vector<2x128xf32>
    %183 = arith.mulf %182, %181 : vector<2x128xf32>
    %cst_75 = arith.constant 5.000000e-01 : f32
    %184 = vector.broadcast %cst_75 : f32 to vector<2x128xf32>
    %185 = arith.addf %183, %184 : vector<2x128xf32>
    %186 = arith.mulf %175, %151 : vector<2x128xf32>
    %187 = arith.mulf %167, %177 : vector<2x128xf32>
    %188 = arith.addf %186, %187 : vector<2x128xf32>
    %189 = math.tanh %188 : vector<2x128xf32>
    %190 = arith.mulf %185, %189 : vector<2x128xf32>
    %c3_i32 = arith.constant 3 : i32
    %191 = arith.index_cast %c3_i32 : i32 to index
    %c0_76 = arith.constant 0 : index
    %c0_77 = arith.constant 0 : index
    %192 = vector.load %arg8[%191, %c0_76, %c0_77] : memref<8x2x512xf32, #tpu.memory_space<vmem>>, vector<1x2x512xf32>
    %193 = vector.shape_cast %192 : vector<1x2x512xf32> to vector<2x512xf32>
    %194 = arith.truncf %190 : vector<2x128xf32> to vector<2x128xbf16>
    %cst_78 = arith.constant dense<0.000000e+00> : vector<2x512xf32>
    %195 = tpu.matmul %194, %79, %cst_78 {dimension_numbers = #tpu.dot_dimension_numbers<[1], [0], [0], [1], [0, 0, 1, 1], [], []>} : vector<2x128xbf16>, vector<128x512xbf16>, vector<2x512xf32> -> vector<2x512xf32>
    %196 = arith.addf %193, %195 : vector<2x512xf32>
    %197 = vector.extract_strided_slice %196 {offsets = [0, 0], sizes = [2, 128], strides = [1, 1]} : vector<2x512xf32> to vector<2x128xf32>
    %cst_79 = arith.constant 5.000000e-01 : f32
    %198 = vector.broadcast %cst_79 : f32 to vector<2x128xf32>
    %199 = arith.mulf %198, %197 : vector<2x128xf32>
    %200 = math.tanh %199 : vector<2x128xf32>
    %cst_80 = arith.constant 5.000000e-01 : f32
    %201 = vector.broadcast %cst_80 : f32 to vector<2x128xf32>
    %202 = arith.mulf %201, %200 : vector<2x128xf32>
    %cst_81 = arith.constant 5.000000e-01 : f32
    %203 = vector.broadcast %cst_81 : f32 to vector<2x128xf32>
    %204 = arith.addf %202, %203 : vector<2x128xf32>
    %205 = vector.extract_strided_slice %196 {offsets = [0, 128], sizes = [2, 128], strides = [1, 1]} : vector<2x512xf32> to vector<2x128xf32>
    %cst_82 = arith.constant 5.000000e-01 : f32
    %206 = vector.broadcast %cst_82 : f32 to vector<2x128xf32>
    %207 = arith.mulf %206, %205 : vector<2x128xf32>
    %208 = math.tanh %207 : vector<2x128xf32>
    %cst_83 = arith.constant 5.000000e-01 : f32
    %209 = vector.broadcast %cst_83 : f32 to vector<2x128xf32>
    %210 = arith.mulf %209, %208 : vector<2x128xf32>
    %cst_84 = arith.constant 5.000000e-01 : f32
    %211 = vector.broadcast %cst_84 : f32 to vector<2x128xf32>
    %212 = arith.addf %210, %211 : vector<2x128xf32>
    %213 = vector.extract_strided_slice %196 {offsets = [0, 256], sizes = [2, 128], strides = [1, 1]} : vector<2x512xf32> to vector<2x128xf32>
    %214 = math.tanh %213 : vector<2x128xf32>
    %215 = vector.extract_strided_slice %196 {offsets = [0, 384], sizes = [2, 128], strides = [1, 1]} : vector<2x512xf32> to vector<2x128xf32>
    %cst_85 = arith.constant 5.000000e-01 : f32
    %216 = vector.broadcast %cst_85 : f32 to vector<2x128xf32>
    %217 = arith.mulf %216, %215 : vector<2x128xf32>
    %218 = math.tanh %217 : vector<2x128xf32>
    %cst_86 = arith.constant 5.000000e-01 : f32
    %219 = vector.broadcast %cst_86 : f32 to vector<2x128xf32>
    %220 = arith.mulf %219, %218 : vector<2x128xf32>
    %cst_87 = arith.constant 5.000000e-01 : f32
    %221 = vector.broadcast %cst_87 : f32 to vector<2x128xf32>
    %222 = arith.addf %220, %221 : vector<2x128xf32>
    %223 = arith.mulf %212, %188 : vector<2x128xf32>
    %224 = arith.mulf %204, %214 : vector<2x128xf32>
    %225 = arith.addf %223, %224 : vector<2x128xf32>
    %226 = math.tanh %225 : vector<2x128xf32>
    %227 = arith.mulf %222, %226 : vector<2x128xf32>
    %c4_i32 = arith.constant 4 : i32
    %228 = arith.index_cast %c4_i32 : i32 to index
    %c0_88 = arith.constant 0 : index
    %c0_89 = arith.constant 0 : index
    %229 = vector.load %arg8[%228, %c0_88, %c0_89] : memref<8x2x512xf32, #tpu.memory_space<vmem>>, vector<1x2x512xf32>
    %230 = vector.shape_cast %229 : vector<1x2x512xf32> to vector<2x512xf32>
    %231 = arith.truncf %227 : vector<2x128xf32> to vector<2x128xbf16>
    %cst_90 = arith.constant dense<0.000000e+00> : vector<2x512xf32>
    %232 = tpu.matmul %231, %79, %cst_90 {dimension_numbers = #tpu.dot_dimension_numbers<[1], [0], [0], [1], [0, 0, 1, 1], [], []>} : vector<2x128xbf16>, vector<128x512xbf16>, vector<2x512xf32> -> vector<2x512xf32>
    %233 = arith.addf %230, %232 : vector<2x512xf32>
    %234 = vector.extract_strided_slice %233 {offsets = [0, 0], sizes = [2, 128], strides = [1, 1]} : vector<2x512xf32> to vector<2x128xf32>
    %cst_91 = arith.constant 5.000000e-01 : f32
    %235 = vector.broadcast %cst_91 : f32 to vector<2x128xf32>
    %236 = arith.mulf %235, %234 : vector<2x128xf32>
    %237 = math.tanh %236 : vector<2x128xf32>
    %cst_92 = arith.constant 5.000000e-01 : f32
    %238 = vector.broadcast %cst_92 : f32 to vector<2x128xf32>
    %239 = arith.mulf %238, %237 : vector<2x128xf32>
    %cst_93 = arith.constant 5.000000e-01 : f32
    %240 = vector.broadcast %cst_93 : f32 to vector<2x128xf32>
    %241 = arith.addf %239, %240 : vector<2x128xf32>
    %242 = vector.extract_strided_slice %233 {offsets = [0, 128], sizes = [2, 128], strides = [1, 1]} : vector<2x512xf32> to vector<2x128xf32>
    %cst_94 = arith.constant 5.000000e-01 : f32
    %243 = vector.broadcast %cst_94 : f32 to vector<2x128xf32>
    %244 = arith.mulf %243, %242 : vector<2x128xf32>
    %245 = math.tanh %244 : vector<2x128xf32>
    %cst_95 = arith.constant 5.000000e-01 : f32
    %246 = vector.broadcast %cst_95 : f32 to vector<2x128xf32>
    %247 = arith.mulf %246, %245 : vector<2x128xf32>
    %cst_96 = arith.constant 5.000000e-01 : f32
    %248 = vector.broadcast %cst_96 : f32 to vector<2x128xf32>
    %249 = arith.addf %247, %248 : vector<2x128xf32>
    %250 = vector.extract_strided_slice %233 {offsets = [0, 256], sizes = [2, 128], strides = [1, 1]} : vector<2x512xf32> to vector<2x128xf32>
    %251 = math.tanh %250 : vector<2x128xf32>
    %252 = vector.extract_strided_slice %233 {offsets = [0, 384], sizes = [2, 128], strides = [1, 1]} : vector<2x512xf32> to vector<2x128xf32>
    %cst_97 = arith.constant 5.000000e-01 : f32
    %253 = vector.broadcast %cst_97 : f32 to vector<2x128xf32>
    %254 = arith.mulf %253, %252 : vector<2x128xf32>
    %255 = math.tanh %254 : vector<2x128xf32>
    %cst_98 = arith.constant 5.000000e-01 : f32
    %256 = vector.broadcast %cst_98 : f32 to vector<2x128xf32>
    %257 = arith.mulf %256, %255 : vector<2x128xf32>
    %cst_99 = arith.constant 5.000000e-01 : f32
    %258 = vector.broadcast %cst_99 : f32 to vector<2x128xf32>
    %259 = arith.addf %257, %258 : vector<2x128xf32>
    %260 = arith.mulf %249, %225 : vector<2x128xf32>
    %261 = arith.mulf %241, %251 : vector<2x128xf32>
    %262 = arith.addf %260, %261 : vector<2x128xf32>
    %263 = math.tanh %262 : vector<2x128xf32>
    %264 = arith.mulf %259, %263 : vector<2x128xf32>
    %c5_i32 = arith.constant 5 : i32
    %265 = arith.index_cast %c5_i32 : i32 to index
    %c0_100 = arith.constant 0 : index
    %c0_101 = arith.constant 0 : index
    %266 = vector.load %arg8[%265, %c0_100, %c0_101] : memref<8x2x512xf32, #tpu.memory_space<vmem>>, vector<1x2x512xf32>
    %267 = vector.shape_cast %266 : vector<1x2x512xf32> to vector<2x512xf32>
    %268 = arith.truncf %264 : vector<2x128xf32> to vector<2x128xbf16>
    %cst_102 = arith.constant dense<0.000000e+00> : vector<2x512xf32>
    %269 = tpu.matmul %268, %79, %cst_102 {dimension_numbers = #tpu.dot_dimension_numbers<[1], [0], [0], [1], [0, 0, 1, 1], [], []>} : vector<2x128xbf16>, vector<128x512xbf16>, vector<2x512xf32> -> vector<2x512xf32>
    %270 = arith.addf %267, %269 : vector<2x512xf32>
    %271 = vector.extract_strided_slice %270 {offsets = [0, 0], sizes = [2, 128], strides = [1, 1]} : vector<2x512xf32> to vector<2x128xf32>
    %cst_103 = arith.constant 5.000000e-01 : f32
    %272 = vector.broadcast %cst_103 : f32 to vector<2x128xf32>
    %273 = arith.mulf %272, %271 : vector<2x128xf32>
    %274 = math.tanh %273 : vector<2x128xf32>
    %cst_104 = arith.constant 5.000000e-01 : f32
    %275 = vector.broadcast %cst_104 : f32 to vector<2x128xf32>
    %276 = arith.mulf %275, %274 : vector<2x128xf32>
    %cst_105 = arith.constant 5.000000e-01 : f32
    %277 = vector.broadcast %cst_105 : f32 to vector<2x128xf32>
    %278 = arith.addf %276, %277 : vector<2x128xf32>
    %279 = vector.extract_strided_slice %270 {offsets = [0, 128], sizes = [2, 128], strides = [1, 1]} : vector<2x512xf32> to vector<2x128xf32>
    %cst_106 = arith.constant 5.000000e-01 : f32
    %280 = vector.broadcast %cst_106 : f32 to vector<2x128xf32>
    %281 = arith.mulf %280, %279 : vector<2x128xf32>
    %282 = math.tanh %281 : vector<2x128xf32>
    %cst_107 = arith.constant 5.000000e-01 : f32
    %283 = vector.broadcast %cst_107 : f32 to vector<2x128xf32>
    %284 = arith.mulf %283, %282 : vector<2x128xf32>
    %cst_108 = arith.constant 5.000000e-01 : f32
    %285 = vector.broadcast %cst_108 : f32 to vector<2x128xf32>
    %286 = arith.addf %284, %285 : vector<2x128xf32>
    %287 = vector.extract_strided_slice %270 {offsets = [0, 256], sizes = [2, 128], strides = [1, 1]} : vector<2x512xf32> to vector<2x128xf32>
    %288 = math.tanh %287 : vector<2x128xf32>
    %289 = vector.extract_strided_slice %270 {offsets = [0, 384], sizes = [2, 128], strides = [1, 1]} : vector<2x512xf32> to vector<2x128xf32>
    %cst_109 = arith.constant 5.000000e-01 : f32
    %290 = vector.broadcast %cst_109 : f32 to vector<2x128xf32>
    %291 = arith.mulf %290, %289 : vector<2x128xf32>
    %292 = math.tanh %291 : vector<2x128xf32>
    %cst_110 = arith.constant 5.000000e-01 : f32
    %293 = vector.broadcast %cst_110 : f32 to vector<2x128xf32>
    %294 = arith.mulf %293, %292 : vector<2x128xf32>
    %cst_111 = arith.constant 5.000000e-01 : f32
    %295 = vector.broadcast %cst_111 : f32 to vector<2x128xf32>
    %296 = arith.addf %294, %295 : vector<2x128xf32>
    %297 = arith.mulf %286, %262 : vector<2x128xf32>
    %298 = arith.mulf %278, %288 : vector<2x128xf32>
    %299 = arith.addf %297, %298 : vector<2x128xf32>
    %300 = math.tanh %299 : vector<2x128xf32>
    %301 = arith.mulf %296, %300 : vector<2x128xf32>
    %c6_i32 = arith.constant 6 : i32
    %302 = arith.index_cast %c6_i32 : i32 to index
    %c0_112 = arith.constant 0 : index
    %c0_113 = arith.constant 0 : index
    %303 = vector.load %arg8[%302, %c0_112, %c0_113] : memref<8x2x512xf32, #tpu.memory_space<vmem>>, vector<1x2x512xf32>
    %304 = vector.shape_cast %303 : vector<1x2x512xf32> to vector<2x512xf32>
    %305 = arith.truncf %301 : vector<2x128xf32> to vector<2x128xbf16>
    %cst_114 = arith.constant dense<0.000000e+00> : vector<2x512xf32>
    %306 = tpu.matmul %305, %79, %cst_114 {dimension_numbers = #tpu.dot_dimension_numbers<[1], [0], [0], [1], [0, 0, 1, 1], [], []>} : vector<2x128xbf16>, vector<128x512xbf16>, vector<2x512xf32> -> vector<2x512xf32>
    %307 = arith.addf %304, %306 : vector<2x512xf32>
    %308 = vector.extract_strided_slice %307 {offsets = [0, 0], sizes = [2, 128], strides = [1, 1]} : vector<2x512xf32> to vector<2x128xf32>
    %cst_115 = arith.constant 5.000000e-01 : f32
    %309 = vector.broadcast %cst_115 : f32 to vector<2x128xf32>
    %310 = arith.mulf %309, %308 : vector<2x128xf32>
    %311 = math.tanh %310 : vector<2x128xf32>
    %cst_116 = arith.constant 5.000000e-01 : f32
    %312 = vector.broadcast %cst_116 : f32 to vector<2x128xf32>
    %313 = arith.mulf %312, %311 : vector<2x128xf32>
    %cst_117 = arith.constant 5.000000e-01 : f32
    %314 = vector.broadcast %cst_117 : f32 to vector<2x128xf32>
    %315 = arith.addf %313, %314 : vector<2x128xf32>
    %316 = vector.extract_strided_slice %307 {offsets = [0, 128], sizes = [2, 128], strides = [1, 1]} : vector<2x512xf32> to vector<2x128xf32>
    %cst_118 = arith.constant 5.000000e-01 : f32
    %317 = vector.broadcast %cst_118 : f32 to vector<2x128xf32>
    %318 = arith.mulf %317, %316 : vector<2x128xf32>
    %319 = math.tanh %318 : vector<2x128xf32>
    %cst_119 = arith.constant 5.000000e-01 : f32
    %320 = vector.broadcast %cst_119 : f32 to vector<2x128xf32>
    %321 = arith.mulf %320, %319 : vector<2x128xf32>
    %cst_120 = arith.constant 5.000000e-01 : f32
    %322 = vector.broadcast %cst_120 : f32 to vector<2x128xf32>
    %323 = arith.addf %321, %322 : vector<2x128xf32>
    %324 = vector.extract_strided_slice %307 {offsets = [0, 256], sizes = [2, 128], strides = [1, 1]} : vector<2x512xf32> to vector<2x128xf32>
    %325 = math.tanh %324 : vector<2x128xf32>
    %326 = vector.extract_strided_slice %307 {offsets = [0, 384], sizes = [2, 128], strides = [1, 1]} : vector<2x512xf32> to vector<2x128xf32>
    %cst_121 = arith.constant 5.000000e-01 : f32
    %327 = vector.broadcast %cst_121 : f32 to vector<2x128xf32>
    %328 = arith.mulf %327, %326 : vector<2x128xf32>
    %329 = math.tanh %328 : vector<2x128xf32>
    %cst_122 = arith.constant 5.000000e-01 : f32
    %330 = vector.broadcast %cst_122 : f32 to vector<2x128xf32>
    %331 = arith.mulf %330, %329 : vector<2x128xf32>
    %cst_123 = arith.constant 5.000000e-01 : f32
    %332 = vector.broadcast %cst_123 : f32 to vector<2x128xf32>
    %333 = arith.addf %331, %332 : vector<2x128xf32>
    %334 = arith.mulf %323, %299 : vector<2x128xf32>
    %335 = arith.mulf %315, %325 : vector<2x128xf32>
    %336 = arith.addf %334, %335 : vector<2x128xf32>
    %337 = math.tanh %336 : vector<2x128xf32>
    %338 = arith.mulf %333, %337 : vector<2x128xf32>
    %c7_i32 = arith.constant 7 : i32
    %339 = arith.index_cast %c7_i32 : i32 to index
    %c0_124 = arith.constant 0 : index
    %c0_125 = arith.constant 0 : index
    %340 = vector.load %arg8[%339, %c0_124, %c0_125] : memref<8x2x512xf32, #tpu.memory_space<vmem>>, vector<1x2x512xf32>
    %341 = vector.shape_cast %340 : vector<1x2x512xf32> to vector<2x512xf32>
    %342 = arith.truncf %338 : vector<2x128xf32> to vector<2x128xbf16>
    %cst_126 = arith.constant dense<0.000000e+00> : vector<2x512xf32>
    %343 = tpu.matmul %342, %79, %cst_126 {dimension_numbers = #tpu.dot_dimension_numbers<[1], [0], [0], [1], [0, 0, 1, 1], [], []>} : vector<2x128xbf16>, vector<128x512xbf16>, vector<2x512xf32> -> vector<2x512xf32>
    %344 = arith.addf %341, %343 : vector<2x512xf32>
    %345 = vector.extract_strided_slice %344 {offsets = [0, 0], sizes = [2, 128], strides = [1, 1]} : vector<2x512xf32> to vector<2x128xf32>
    %cst_127 = arith.constant 5.000000e-01 : f32
    %346 = vector.broadcast %cst_127 : f32 to vector<2x128xf32>
    %347 = arith.mulf %346, %345 : vector<2x128xf32>
    %348 = math.tanh %347 : vector<2x128xf32>
    %cst_128 = arith.constant 5.000000e-01 : f32
    %349 = vector.broadcast %cst_128 : f32 to vector<2x128xf32>
    %350 = arith.mulf %349, %348 : vector<2x128xf32>
    %cst_129 = arith.constant 5.000000e-01 : f32
    %351 = vector.broadcast %cst_129 : f32 to vector<2x128xf32>
    %352 = arith.addf %350, %351 : vector<2x128xf32>
    %353 = vector.extract_strided_slice %344 {offsets = [0, 128], sizes = [2, 128], strides = [1, 1]} : vector<2x512xf32> to vector<2x128xf32>
    %cst_130 = arith.constant 5.000000e-01 : f32
    %354 = vector.broadcast %cst_130 : f32 to vector<2x128xf32>
    %355 = arith.mulf %354, %353 : vector<2x128xf32>
    %356 = math.tanh %355 : vector<2x128xf32>
    %cst_131 = arith.constant 5.000000e-01 : f32
    %357 = vector.broadcast %cst_131 : f32 to vector<2x128xf32>
    %358 = arith.mulf %357, %356 : vector<2x128xf32>
    %cst_132 = arith.constant 5.000000e-01 : f32
    %359 = vector.broadcast %cst_132 : f32 to vector<2x128xf32>
    %360 = arith.addf %358, %359 : vector<2x128xf32>
    %361 = vector.extract_strided_slice %344 {offsets = [0, 256], sizes = [2, 128], strides = [1, 1]} : vector<2x512xf32> to vector<2x128xf32>
    %362 = math.tanh %361 : vector<2x128xf32>
    %363 = vector.extract_strided_slice %344 {offsets = [0, 384], sizes = [2, 128], strides = [1, 1]} : vector<2x512xf32> to vector<2x128xf32>
    %cst_133 = arith.constant 5.000000e-01 : f32
    %364 = vector.broadcast %cst_133 : f32 to vector<2x128xf32>
    %365 = arith.mulf %364, %363 : vector<2x128xf32>
    %366 = math.tanh %365 : vector<2x128xf32>
    %cst_134 = arith.constant 5.000000e-01 : f32
    %367 = vector.broadcast %cst_134 : f32 to vector<2x128xf32>
    %368 = arith.mulf %367, %366 : vector<2x128xf32>
    %cst_135 = arith.constant 5.000000e-01 : f32
    %369 = vector.broadcast %cst_135 : f32 to vector<2x128xf32>
    %370 = arith.addf %368, %369 : vector<2x128xf32>
    %371 = arith.mulf %360, %336 : vector<2x128xf32>
    %372 = arith.mulf %352, %362 : vector<2x128xf32>
    %373 = arith.addf %371, %372 : vector<2x128xf32>
    %374 = math.tanh %373 : vector<2x128xf32>
    %375 = arith.mulf %370, %374 : vector<2x128xf32>
    %c8_i32 = arith.constant 8 : i32
    %c0_136 = arith.constant 0 : index
    %c0_137 = arith.constant 0 : index
    %376 = vector.load %arg4[%c0_136, %c0_137] : memref<128x128xbf16, #tpu.memory_space<vmem>>, vector<128x128xbf16>
    %377 = arith.truncf %375 : vector<2x128xf32> to vector<2x128xbf16>
    %cst_138 = arith.constant dense<0.000000e+00> : vector<2x128xf32>
    %378 = tpu.matmul %377, %376, %cst_138 {dimension_numbers = #tpu.dot_dimension_numbers<[1], [0], [0], [1], [0, 0, 1, 1], [], []>} : vector<2x128xbf16>, vector<128x128xbf16>, vector<2x128xf32> -> vector<2x128xf32>
    %379 = arith.addf %78, %378 : vector<2x128xf32>
    %c0_139 = arith.constant 0 : index
    %c0_140 = arith.constant 0 : index
    %380 = vector.load %arg7[%c0_139, %c0_140] : memref<2x128xf32, #tpu.memory_space<vmem>>, vector<2x128xf32>
    tpu.vector_store %arg7[%c0_139, %c0_140], %379 {strides = array<i32>} : memref<2x128xf32, #tpu.memory_space<vmem>>, vector<2x128xf32>,
    return
  }
}

</mosaic_0001>

<bundles_post_ra>
// kernel: forward.1
= control target key start
LH: loop header
LB: loop body
LE: loop exit
PB: predicated region body
PF: predicated region fallthrough
CT: control target
= control target key end

     0   :  { %12 = vsyncpa [#allocation4], 0  ;;  %s2581_s0 = inlined_call_operand.vmem [shape: f32[8,2,16], index: 0, kind: input, shape index: {}]   ;;  %s2582_s1 = inlined_call_operand.hbm [shape: bf16[16,1024], index: 1, kind: input, shape index: {}]   ;;  %s2583_s2 = inlined_call_operand.hbm [shape: bf16[128,512], index: 2, kind: input, shape index: {}]   ;;  %s2584_s3 = inlined_call_operand.vmem [shape: f32[1,1024], index: 3, kind: input, shape index: {}]   ;;  %s2585_s4 = inlined_call_operand.hbm [shape: bf16[128,128], index: 4, kind: input, shape index: {}]   ;;  %s2586_s5 = inlined_call_operand.hbm [shape: bf16[128,128], index: 5, kind: input, shape index: {}]   ;;  %s2587_s6 = inlined_call_operand.vmem [shape: f32[1,128], index: 6, kind: input, shape index: {}]   ;;  %s2588_s7 = inlined_call_operand.hbm [shape: f32[2,128], index: 7, kind: output, shape index: {}]  }
   0x1   :  { %13 = vsyncpa [#allocation7], 0 }
   0x2   :  { %14 = vsyncpa [#allocation10], 0  ;;  %s35_s26 = sshll.u32 %s2583_s2, 4  ;;  %s36_s26 = int_to_ptr.hbm [resolvable:$true] %s35_s26 }
   0x3   :  { %15 = vsyncpa [#allocation5], 0  ;;  %s2027_s27 = smov [#allocation6]   ;;  %s22_s8 = sshll.u32 %s2582_s1, 4  ;;  %s23_s8 = int_to_ptr.hbm [resolvable:$true] %s22_s8 }
   0x4   :  { %s37_s28 = sshll.u32 %s2027_s27, 4  ;;  %s2028_s9 = smov 256   ;;  %s38_s28 = int_to_ptr.vmem [resolvable:$true] %s37_s28 }
   0x5   :  { %s2029_s10 = smov 16   ;;  %s2030_s11 = smov [#allocation3]  }
   0x6   :  { %43 = dma.hbm_to_vmem [thread:$0]  %s36_s26, 4096, %s38_s28, [#allocation7], %s2028_s9, %s2028_s9, %s2029_s10  }
   0x7   :  { %s24_s12 = sshll.u32 %s2030_s11, 4  ;;  %s2031_s13 = smov 512   ;;  %s25_s12 = int_to_ptr.vmem [resolvable:$true] %s24_s12 }
   0x8   :  { %s2032_s14 = smov 32   ;;  %s50_s16 = sshll.u32 %s2585_s4, 4  ;;  %s51_s16 = int_to_ptr.hbm [resolvable:$true] %s50_s16 }
   0x9   :  { %30 = dma.hbm_to_vmem [thread:$0]  %s23_s8, 1024, %s25_s12, [#allocation4], %s2031_s13, %s2031_s13, %s2032_s14  }
   0xa   :  { %s2033_s17 = smov [#allocation8]   ;;  %s63_s20 = sshll.u32 %s2586_s5, 4  ;;  %s64_s20 = int_to_ptr.hbm [resolvable:$true] %s63_s20 }
   0xb   :  { %s52_s18 = sshll.u32 %s2033_s17, 4  ;;  %s2034_s21 = smov 64   ;;  %s53_s18 = int_to_ptr.vmem [resolvable:$true] %s52_s18 }
   0xc   :  { %s2035_s22 = smov 4   ;;  %s2036_s23 = smov [#allocation9]  }
   0xd   :  { %58 = dma.hbm_to_vmem [thread:$0]  %s51_s16, 1024, %s53_s18, [#allocation7], %s2034_s21, %s2034_s21, %s2035_s22  }
   0xe   :  { %s65_s24 = sshll.u32 %s2036_s23, 4  ;;  %s66_s24 = int_to_ptr.vmem [resolvable:$true] %s65_s24 }
   0xf   :  { %71 = dma.hbm_to_vmem [thread:$0]  %s64_s20, 1024, %s66_s24, [#allocation10], %s2034_s21, %s2034_s21, %s2035_s22  }
  0x10   :  { %2019 = dma.done.wait [#allocation4], 1024  }
  0x11   :  { %2020 = vsyncadd [#allocation4], 4294966272 }
  0x12   :  { %2021 = dma.done.wait [#allocation7], 5120  }
  0x13   :  { %2022 = vsyncadd [#allocation7], 4294962176 }
  0x14   :  { %2023 = dma.done.wait [#allocation10], 1024  }
  0x15   :  { %2024 = vsyncadd [#allocation10], 4294966272  ;;  %v1510_v0 = vld [vmem:[#allocation3] sm:$0xf]  ;;  %v1740_v2 = vld [vmem:[#allocation3 + $0x4] sm:$0xf] }
  0x16   :  { %v1744_v1 = vld [vmem:[#allocation3 + $0x1c] sm:$0xf0]  ;;  %v1512_v4 = vld [vmem:[#allocation3 + $0x20] sm:$0xf0]  ;;  %v91_v5 = vld [vmem:[%s2581_s0] sm:$0x3] }
  0x17   :  { %v1511_v3 = vor.u32 %v1744_v1, %v1510_v0  ;;  %v1515_v6 = vor.u32 %v1740_v2, %v1512_v4  ;;  %v92_v7 = vld [vmem:[%s2581_s0 + $0x2] sm:$0x3]  ;;  %v93_v8 = vld [vmem:[%s2581_s0 + $0x4] sm:$0x3]  ;;  %v94_v9 = vld [vmem:[%s2581_s0 + $0x6] sm:$0x3] }
  0x18   :  { %v95_v10 = vld [vmem:[%s2581_s0 + $0x8] sm:$0x3]  ;;  %v96_v11 = vld [vmem:[%s2581_s0 + $0xa] sm:$0x3]  ;;  %115 = vst [vmem:[#allocation1] ss:$4 sm:$0xff] %v91_v5 }
  0x19   :  { %204 = vmatpush.bf16.msra.mxu2 %v1511_v3  ;;  %218 = vmatpush.bf16.msra.mxu3 %v1515_v6  ;;  %v1518_v12 = vld [vmem:[#allocation3 + $0x8] sm:$0xf]  ;;  %117 = vst [vmem:[#allocation1 + $0x1] ss:$4 sm:$0xff] %v92_v7  ;;  %v1741_v15 = vld [vmem:[#allocation3 + $0xc] sm:$0xf] }
  0x1a   :  { %v1745_v13 = vld [vmem:[#allocation3 + $0x24] sm:$0xf0]  ;;  %v1520_v16 = vld [vmem:[#allocation3 + $0x28] sm:$0xf0]  ;;  %v97_v17 = vld [vmem:[%s2581_s0 + $0xc] sm:$0x3] }
  0x1b   :  { %v1519_v14 = vor.u32 %v1745_v13, %v1518_v12  ;;  %v98_v18 = vld [vmem:[%s2581_s0 + $0xe] sm:$0x3]  ;;  %119 = vst [vmem:[#allocation1 + $0x2] ss:$4 sm:$0xff] %v93_v8  ;;  %v1523_v19 = vor.u32 %v1741_v15, %v1520_v16  ;;  %v1526_v20 = vld [vmem:[#allocation3 + $0x10] sm:$0xf] }
  0x1c   :  { %121 = vst [vmem:[#allocation1 + $0x3] ss:$4 sm:$0xff] %v94_v9  ;;  %v1746_v21 = vld [vmem:[#allocation3 + $0x2c] sm:$0xf0]  ;;  %v1742_v23 = vld [vmem:[#allocation3 + $0x14] sm:$0xf] }
  0x1d   :  { %232 = vmatpush.bf16.msrb.mxu2 %v1519_v14  ;;  %123 = vst [vmem:[#allocation1 + $0x20] ss:$4 sm:$0xff] %v95_v10  ;;  %246 = vmatpush.bf16.msrb.mxu3 %v1523_v19  ;;  %v1527_v22 = vor.u32 %v1746_v21, %v1526_v20  ;;  %v1528_v24 = vld [vmem:[#allocation3 + $0x30] sm:$0xf0]  ;;  %v1534_v26 = vld [vmem:[#allocation3 + $0x18] sm:$0xf] }
  0x1e   :  { %125 = vst [vmem:[#allocation1 + $0x21] ss:$4 sm:$0xff] %v96_v11  ;;  %v1531_v25 = vor.u32 %v1742_v23, %v1528_v24  ;;  %v1747_v27 = vld [vmem:[#allocation3 + $0x34] sm:$0xf0]  ;;  %v1743_v28 = vld [vmem:[#allocation3 + $0x1c] sm:$0xf] }
  0x1f   :  { %127 = vst [vmem:[#allocation1 + $0x22] ss:$4 sm:$0xff] %v97_v17  ;;  %260 = vmatpush.bf16.msra.mxu0 %v1527_v22  ;;  %v1536_v29 = vld [vmem:[#allocation3 + $0x38] sm:$0xf0]  ;;  %vm193_vm0 = vcmask 130048   ;;  %v1535_v32 = vor.u32 %v1747_v27, %v1534_v26  ;;  %vm312_vm1 = vcmask 1041408  }
  0x20   :  { %129 = vst [vmem:[#allocation1 + $0x23] ss:$4 sm:$0xff] %v98_v18  ;;  %273 = vmatpush.bf16.msra.mxu1 %v1531_v25  ;;  %v1539_v33 = vor.u32 %v1743_v28, %v1536_v29  ;;  %v2118_v35 = vld [vmem:[%s2584_s3] sm:$0xff]  ;;  %v1754_v47 = vld [vmem:[#allocation9 + $0x30] sm:$0xff]  ;;  %v1753_v51 = vld [vmem:[#allocation9 + $0x28] sm:$0xff]  ;;  %vm314_vm2 = vcmask 1045508  }
  0x21   :  { %v1755_v38 = vld [vmem:[#allocation9 + $0x38] sm:$0xff]  ;;  %v137_v39 = vperm.slane %v2118_v35, 0  ;;  %v138_v40 = vperm.slane %v2118_v35, 1  ;;  %v139_v54 = vperm.slane %v2118_v35, 2  ;;  %v140_v55 = vperm.slane %v2118_v35, 3  ;;  %v1752_v57 = vld [vmem:[#allocation9 + $0x20] sm:$0xff] }
  0x22   :  { %v1784_v60 = vld [vmem:[#allocation6 + $0xe4] sm:$0xf]  ;;  %v1696_v61 = vld [vmem:[#allocation6 + $0xf0] sm:$0xf0]  ;;  %v1702_v62 = vld [vmem:[#allocation6 + $0xe8] sm:$0xf] }
  0x23   :  { %v130_v30 = vld.sshfl [vmem:[#allocation1] sm:$0xff pattern:$0x73625140]  ;;  %477 = vmatpush.bf16.msrb.mxu0 %v1755_v38  ;;  %v2146_v1 = vor.u32 %v1784_v60, %v1696_v61  ;;  %v142_v3 = vperm.slane %v2118_v35, 5  ;;  %vm316_vm3 = vcmask 1043456   ;;  %v141_v9 = vperm.slane %v2118_v35, 4 }
  0x24   :  { %v1787_v2 = vld [vmem:[#allocation6 + $0xf4] sm:$0xf0]  ;;  %v1780_v11 = vld [vmem:[#allocation6 + $0xc4] sm:$0xf]  ;;  %v1680_v12 = vld [vmem:[#allocation6 + $0xd0] sm:$0xf0] }
  0x25   :  { %v2149_v4 = vor.u32 %v1787_v2, %v1702_v62  ;;  %v1751_v5 = vld [vmem:[#allocation9 + $0x18] sm:$0xff]  ;;  %v2159_v15 = vor.u32 %v1780_v11, %v1680_v12  ;;  %v1686_v16 = vld [vmem:[#allocation6 + $0xc8] sm:$0xf]  ;;  %v1750_v18 = vld [vmem:[#allocation9 + $0x10] sm:$0xff]  ;;  %s2038_s17 = smov [#allocation11]   ;;  %s1496_s20 = sshll.u32 %s2588_s7, 4  ;;  %s1497_s20 = int_to_ptr.hbm [resolvable:$true] %s1496_s20 }
  0x26   :  { %v1783_v17 = vld [vmem:[#allocation6 + $0xd4] sm:$0xf0]  ;;  %v1694_v24 = vld [vmem:[#allocation6 + $0xe0] sm:$0xf]  ;;  %v1786_v25 = vld [vmem:[#allocation6 + $0xec] sm:$0xf0] }
  0x27   :  { %v131_v31 = vld.sshfl [vmem:[#allocation1 + $0x20] sm:$0xff pattern:$0x73625140]  ;;  %478 = vmatpush.bf16.msrb.mxu0 %v1754_v47  ;;  %v2164_v20 = vor.u32 %v1783_v17, %v1686_v16  ;;  %v2172_v28 = vor.u32 %v1786_v25, %v1694_v24  ;;  %v1776_v29 = vld [vmem:[#allocation6 + $0xa4] sm:$0xf]  ;;  %s1494_s18 = sshll.u32 %s2038_s17, 4  ;;  %s1495_s18 = int_to_ptr.vmem [resolvable:$true] %s1494_s18 }
  0x28   :  { %v134_v34 = vpack.c.bf16 %v131_v31, %v130_v30  ;;  %v1664_v30 = vld [vmem:[#allocation6 + $0xb0] sm:$0xf0]  ;;  %v1670_v31 = vld [vmem:[#allocation6 + $0xa8] sm:$0xf]  ;;  %v1775_v61 = vld [vmem:[#allocation6 + $0x94] sm:$0xf0] }
  0x29   :  { %683 = vmatpush.bf16.msrb.mxu1 %v2172_v28  ;;  %v1654_v60 = vld [vmem:[#allocation6 + $0x88] sm:$0xf]  ;;  %v1785_v62 = vld [vmem:[#allocation6 + $0xec] sm:$0xf]  ;;  %v1771_v12 = vld [vmem:[#allocation6 + $0x74] sm:$0xf0] }
  0x2a   :  { %1540 = vmatmul.msk.bf16.vlgmr.msra.gmra.mxu2 %vm193_vm0, %v134_v34  ;;  %1541 = vmatmul.msk.bf16.vlgmr.msra.gmra.mxu3 %vm193_vm0, %v134_v34  ;;  %v2201_v2 = vor.u32 %v1775_v61, %v1654_v60  ;;  %v1616_v25 = vld [vmem:[#allocation6 + $0x50] sm:$0xf0] }
  0x2b   :  { %286 = vmatpush.bf16.msra.mxu2 %v1535_v32  ;;  %299 = vmatpush.bf16.msra.mxu3 %v1539_v33  ;;  %v2174_v33 = vor.u32 %v1776_v29, %v1664_v30  ;;  %v1622_v29 = vld [vmem:[#allocation6 + $0x48] sm:$0xf]  ;;  %v1767_v30 = vld [vmem:[#allocation6 + $0x54] sm:$0xf0]  ;;  %v1600_v60 = vld [vmem:[#allocation6 + $0x30] sm:$0xf0] }
  0x2c   :  { %1544 = vmatmul.msk.bf16.vlgmr.msra.gmra.mxu0 %vm193_vm0, %v134_v34  ;;  %1545 = vmatmul.msk.bf16.vlgmr.msra.gmra.mxu1 %vm193_vm0, %v134_v34 }
  0x2d   :  { %479 = vmatpush.bf16.msrb.mxu0 %v1753_v51  ;;  %v1748_v51 = vld [vmem:[#allocation9] sm:$0xff] }
  0x31   :  { %480 = vmatpush.bf16.msrb.mxu0 %v1752_v57 }
  0x35   :  { %481 = vmatpush.bf16.msrb.mxu0 %v1751_v5  ;;  %v1778_v5 = vld [vmem:[#allocation6 + $0xac] sm:$0xf0] }
  0x39   :  { %482 = vmatpush.bf16.msrb.mxu0 %v1750_v18 }
  0x3a   :  { %1542 = vmatmul.msk.bf16.vlgmr.msrb.gmra.mxu2 %vm193_vm0, %v134_v34  ;;  %1543 = vmatmul.msk.bf16.vlgmr.msrb.gmra.mxu3 %vm193_vm0, %v134_v34 }
  0x3b   :  { %696 = vmatpush.bf16.msrb.mxu2 %v2146_v1  ;;  %709 = vmatpush.bf16.msrb.mxu3 %v2149_v4 }
  0x3f   :  { %697 = vmatpush.bf16.msrb.mxu2 %v2159_v15  ;;  %710 = vmatpush.bf16.msrb.mxu3 %v2164_v20 }
  0x43   :  { %698 = vmatpush.bf16.msrb.mxu2 %v2174_v33 }
  0x4a   :  { %1546 = vmatmul.msk.bf16.vlgmr.msra.gmra.mxu2 %vm193_vm0, %v134_v34  ;;  %1547 = vmatmul.msk.bf16.vlgmr.msra.gmra.mxu3 %vm193_vm0, %v134_v34  ;;  %v1779_v34 = vld [vmem:[#allocation6 + $0xb4] sm:$0xf0] }
  0xa9   :  { %v262_v36 = vpop.f32.mrf.mxu0  ;;  %v275_v37 = vpop.f32.mrf.mxu1 }
  0xaa   :  { %v1749_v36 = vld [vmem:[#allocation9 + $0x8] sm:$0xff] }
  0xab   :  { %483 = vmatpush.bf16.msrb.mxu0 %v1749_v36  ;;  %v1672_v36 = vld [vmem:[#allocation6 + $0xb8] sm:$0xf0] }
  0xad   :  { %v206_v41 = vpop.f32.mrf.mxu2  ;;  %v220_v42 = vpop.f32.mrf.mxu3 }
  0xae   :  { %v2122_v43 = vadd.f32 %v206_v41, %v137_v39  ;;  %v2124_v44 = vadd.f32 %v220_v42, %v138_v40  ;;  %v1678_v42 = vld [vmem:[#allocation6 + $0xc0] sm:$0xf] }
  0xaf   :  { %484 = vmatpush.bf16.msrb.mxu0 %v1748_v51  ;;  %v1770_v51 = vld [vmem:[#allocation6 + $0x6c] sm:$0xf0] }
  0xb0   :  { %320 = vst.sshfl [vmem:[#allocation1] sm:$0xff pattern:$0x73625140] %v2122_v43  ;;  %v309_v45 = vrot.slane %v2124_v44, 6 }
  0xb1   :  { %321 = vst.sshfl [vmem:[#allocation1 + $0x8] sm:$0xff pattern:$0x73625140] %v2124_v44  ;;  %v276_v8 = vpop.f32.mrf.mxu1  ;;  %v263_v10 = vpop.f32.mrf.mxu0 }
  0xb2   :  { %v313_v46 = vsel %vm312_vm1, %v2122_v43, %v309_v45  ;;  %v277_v14 = vadd.f32 %v276_v8, %v142_v3  ;;  %v264_v23 = vadd.f32 %v263_v10, %v141_v9  ;;  %v143_v45 = vperm.slane %v2118_v35, 6  ;;  %v1662_v3 = vld [vmem:[#allocation6 + $0xa0] sm:$0xf]  ;;  %v1768_v8 = vld [vmem:[#allocation6 + $0x64] sm:$0xf] }
  0xb3   :  { %v1632_v9 = vld [vmem:[#allocation6 + $0x70] sm:$0xf0]  ;;  %v1638_v10 = vld [vmem:[#allocation6 + $0x68] sm:$0xf] }
  0xb4   :  { %v391_v32 = vmul.f32 0.5, %v277_v14  ;;  %v387_v41 = vmul.f32 0.5, %v264_v23  ;;  %v2209_v11 = vor.u32 %v1768_v8, %v1632_v9  ;;  %v1688_v14 = vld [vmem:[#allocation6 + $0xd8] sm:$0xf0]  ;;  %v2213_v17 = vor.u32 %v1771_v12, %v1638_v10  ;;  %v1764_v23 = vld [vmem:[#allocation6 + $0x44] sm:$0xf] }
  0xb5   :  { %v208_v48 = vpop.f32.mrf.mxu2  ;;  %v222_v49 = vpop.f32.mrf.mxu3  ;;  %v1766_v8 = vld [vmem:[#allocation6 + $0x4c] sm:$0xf0]  ;;  %v1756_v9 = vld [vmem:[#allocation6 + $0x4] sm:$0xf]  ;;  %v1584_v10 = vld [vmem:[#allocation6 + $0x10] sm:$0xf0] }
  0xb6   :  { %v2131_v50 = vadd.f32 %v222_v49, %v138_v40  ;;  %v2133_v52 = vadd.f32 %v208_v48, %v137_v39  ;;  %v2181_v40 = vor.u32 %v1779_v34, %v1670_v31  ;;  %1809 = vtanh.f32 %v391_v32  ;;  %v1772_v49 = vld [vmem:[#allocation6 + $0x84] sm:$0xf]  ;;  %v1777_v34 = vld [vmem:[#allocation6 + $0xac] sm:$0xf] }
  0xb7   :  { %1811 = vtanh.f32 %v387_v41  ;;  %v2222_v32 = vor.u32 %v1764_v23, %v1616_v25  ;;  %v2226_v41 = vor.u32 %v1767_v30, %v1622_v29  ;;  %v1640_v23 = vld [vmem:[#allocation6 + $0x78] sm:$0xf0]  ;;  %v1598_v25 = vld [vmem:[#allocation6 + $0x20] sm:$0xf]  ;;  %v1762_v29 = vld [vmem:[#allocation6 + $0x2c] sm:$0xf0] }
  0xb8   :  { %v351_v53 = vrot.slane %v2131_v50, 6  ;;  %711 = vmatpush.bf16.msrb.mxu3 %v2181_v40 }
  0xba   :  { %v2140_v56 = vsel %vm312_vm1, %v2133_v52, %v351_v53 }
  0xbc   :  { %712 = vmatpush.bf16.msrb.mxu3 %v2201_v2  ;;  %v1810_v16 = vpop.eup %1809 }
  0xbd   :  { %v234_v58 = vpop.f32.mrf.mxu2  ;;  %v248_v59 = vpop.f32.mrf.mxu3 }
  0xbe   :  { %v2142_v63 = vadd.f32 %v234_v58, %v139_v54  ;;  %v2144_v0 = vadd.f32 %v248_v59, %v140_v55 }
  0xc0   :  { %v310_v6 = vrot.slane %v2142_v63, 4  ;;  %322 = vst.sshfl [vmem:[#allocation1 + $0x10] sm:$0xff pattern:$0x73625140] %v2142_v63  ;;  %v311_v7 = vrot.slane %v2144_v0, 2  ;;  %713 = vmatpush.bf16.msrb.mxu3 %v2213_v17 }
  0xc1   :  { %323 = vst.sshfl [vmem:[#allocation1 + $0x18] sm:$0xff pattern:$0x73625140] %v2144_v0 }
  0xc2   :  { %v315_v13 = vsel %vm314_vm2, %v310_v6, %v311_v7  ;;  %v2206_v7 = vor.u32 %v1778_v5, %v1662_v3  ;;  %v1614_v3 = vld [vmem:[#allocation6 + $0x40] sm:$0xf] }
  0xc3   :  { %v2162_v19 = vsel %vm316_vm3, %v313_v46, %v315_v13  ;;  %v1782_v46 = vld [vmem:[#allocation6 + $0xcc] sm:$0xf0]  ;;  %v1781_v13 = vld [vmem:[#allocation6 + $0xcc] sm:$0xf]  ;;  %v2250_v12 = vor.u32 %v1766_v8, %v1614_v3  ;;  %v1592_v8 = vld [vmem:[#allocation6 + $0x18] sm:$0xf0] }
  0xc4   :  { %v2190_v48 = vor.u32 %v1782_v46, %v1678_v42  ;;  %v2215_v18 = vor.u32 %v1781_v13, %v1688_v14  ;;  %v1630_v42 = vld [vmem:[#allocation6 + $0x60] sm:$0xf]  ;;  %714 = vmatpush.bf16.msrb.mxu3 %v2226_v41  ;;  %v2252_v13 = vor.u32 %v1756_v9, %v1584_v10  ;;  %v1590_v14 = vld [vmem:[#allocation6 + $0x8] sm:$0xf]  ;;  %v1757_v3 = vld [vmem:[#allocation6 + $0xc] sm:$0xf] }
  0xc5   :  { %v236_v21 = vpop.f32.mrf.mxu2  ;;  %v250_v22 = vpop.f32.mrf.mxu3 }
  0xc6   :  { %v2167_v26 = vadd.f32 %v236_v21, %v139_v54  ;;  %v2169_v27 = vadd.f32 %v250_v22, %v140_v55  ;;  %v144_v54 = vperm.slane %v2118_v35, 7  ;;  %v1648_v55 = vld [vmem:[#allocation6 + $0x90] sm:$0xf0]  ;;  %684 = vmatpush.bf16.msrb.mxu1 %v2190_v48  ;;  %v1646_v21 = vld [vmem:[#allocation6 + $0x80] sm:$0xf] }
  0xc7   :  { %v2199_v59 = vor.u32 %v1772_v49, %v1648_v55  ;;  %v1774_v22 = vld [vmem:[#allocation6 + $0x8c] sm:$0xf0]  ;;  %v2231_v49 = vor.u32 %v1777_v34, %v1672_v36  ;;  %v1763_v35 = vld [vmem:[#allocation6 + $0x34] sm:$0xf0]  ;;  %v2261_v36 = vor.u32 %v1762_v29, %v1598_v25 }
  0xc8   :  { %v2176_v37 = vld [vmem:[#allocation1 + $0x1] ss:$4 sm:$0xff]  ;;  %v352_v38 = vrot.slane %v2167_v26, 4  ;;  %v353_v39 = vrot.slane %v2169_v27, 2  ;;  %v2217_v24 = vor.u32 %v1774_v22, %v1646_v21 }
  0xc9   :  { %329 = vst.sshfl [vmem:[#allocation1] sm:$0xff pattern:$0x73625140] %v2122_v43  ;;  %699 = vmatpush.bf16.msrb.mxu2 %v2199_v59  ;;  %v1769_v21 = vld [vmem:[#allocation6 + $0x6c] sm:$0xf] }
  0xca   :  { %330 = vst.sshfl [vmem:[#allocation1 + $0x8] sm:$0xff pattern:$0x73625140] %v2124_v44  ;;  %v355_v47 = vsel %vm314_vm2, %v352_v38, %v353_v39  ;;  %685 = vmatpush.bf16.msrb.mxu1 %v2206_v7  ;;  %v1812_v38 = vpop.eup %1811  ;;  %v393_v39 = vmul.f32 0.5, %v1810_v16  ;;  %v1759_v16 = vld [vmem:[#allocation6 + $0x14] sm:$0xf0]  ;;  %v2259_v34 = vor.u32 %v1769_v21, %v1640_v23 }
  0xcb   :  { %331 = vst.sshfl [vmem:[#allocation1 + $0x10] sm:$0xff pattern:$0x73625140] %v2142_v63  ;;  %v2194_v53 = vsel %vm316_vm3, %v2140_v56, %v355_v47  ;;  %v1704_v56 = vld [vmem:[#allocation6 + $0xf8] sm:$0xf0]  ;;  %v2255_v22 = vor.u32 %v1759_v16, %v1590_v14  ;;  %v2290_v16 = vor.u32 %v1757_v3, %v1592_v8 }
  0xcc   :  { %332 = vst.sshfl [vmem:[#allocation1 + $0x18] sm:$0xff pattern:$0x73625140] %v2144_v0  ;;  %v2204_v6 = vor.u32 %v1785_v62, %v1704_v56  ;;  %v394_v61 = vadd.f32 0.5, %v393_v39  ;;  %v1624_v39 = vld [vmem:[#allocation6 + $0x58] sm:$0xf0] }
  0xcd   :  { %v288_v57 = vpop.f32.mrf.mxu2  ;;  %v301_v58 = vpop.f32.mrf.mxu3  ;;  %700 = vmatpush.bf16.msrb.mxu2 %v2209_v11 }
  0xce   :  { %722 = vmatpush.bf16.msra.mxu0 %v2204_v6  ;;  %686 = vmatpush.bf16.msrb.mxu1 %v2217_v24  ;;  %v2236_v57 = vor.u32 %v1770_v51, %v1630_v42  ;;  %v1760_v58 = vld [vmem:[#allocation6 + $0x24] sm:$0xf]  ;;  %v1758_v51 = vld [vmem:[#allocation6 + $0xc] sm:$0xf0] }
  0xcf   :  { %v2241_v56 = vor.u32 %v1760_v58, %v1600_v60 }
  0xd1   :  { %701 = vmatpush.bf16.msrb.mxu2 %v2222_v32 }
  0xd2   :  { %723 = vmatpush.bf16.msra.mxu0 %v2215_v18  ;;  %687 = vmatpush.bf16.msrb.mxu1 %v2236_v57 }
  0xd3   :  { %v2219_v31 = vld [vmem:[#allocation1 + $0x2] ss:$4 sm:$0xff] }
  0xd4   :  { %341 = vst.sshfl [vmem:[#allocation1 + $0x18] sm:$0xff pattern:$0x73625140] %v2144_v0 }
  0xd5   :  { %338 = vst.sshfl [vmem:[#allocation1] sm:$0xff pattern:$0x73625140] %v2122_v43  ;;  %v289_v46 = vpop.f32.mrf.mxu2  ;;  %v302_v47 = vpop.f32.mrf.mxu3  ;;  %v389_v43 = vmul.f32 0.5, %v1812_v38  ;;  %702 = vmatpush.bf16.msrb.mxu2 %v2241_v56  ;;  %v1765_v38 = vld [vmem:[#allocation6 + $0x4c] sm:$0xf] }
  0xd6   :  { %339 = vst.sshfl [vmem:[#allocation1 + $0x8] sm:$0xff pattern:$0x73625140] %v2124_v44  ;;  %v290_v0 = vadd.f32 %v289_v46, %v143_v45  ;;  %v303_v55 = vadd.f32 %v302_v47, %v144_v54  ;;  %v1606_v44 = vld [vmem:[#allocation6 + $0x28] sm:$0xf]  ;;  %724 = vmatpush.bf16.msra.mxu0 %v2231_v49  ;;  %688 = vmatpush.bf16.msrb.mxu1 %v2250_v12 }
  0xd7   :  { %340 = vst.sshfl [vmem:[#allocation1 + $0x10] sm:$0xff pattern:$0x73625140] %v2142_v63  ;;  %v2245_v45 = vor.u32 %v1763_v35, %v1606_v44  ;;  %v1773_v63 = vld [vmem:[#allocation6 + $0x8c] sm:$0xf]  ;;  %v390_v30 = vadd.f32 0.5, %v389_v43  ;;  %v2273_v60 = vor.u32 %v1765_v38, %v1624_v39 }
  0xd8   :  { %1813 = vtanh.f32 %v290_v0  ;;  %v396_v62 = vmul.f32 0.5, %v303_v55  ;;  %v1656_v54 = vld [vmem:[#allocation6 + $0x98] sm:$0xf0]  ;;  %v1582_v47 = vld [vmem:[#allocation6] sm:$0xf]  ;;  %v400_v0 = vmul.f32 0.0, %v394_v61 }
  0xd9   :  { %v2247_v5 = vor.u32 %v1773_v63, %v1656_v54  ;;  %715 = vmatpush.bf16.msrb.mxu3 %v2245_v45  ;;  %703 = vmatpush.bf16.msrb.mxu2 %v2252_v13  ;;  %v2275_v61 = vor.u32 %v1758_v51, %v1582_v47  ;;  %v2037_v44 = vmov 0   ;;  %v1608_v35 = vld [vmem:[#allocation6 + $0x38] sm:$0xf0] }
  0xda   :  { %1815 = vtanh.f32 %v396_v62  ;;  %689 = vmatpush.bf16.msrb.mxu1 %v2261_v36  ;;  %v1761_v62 = vld [vmem:[#allocation6 + $0x2c] sm:$0xf] }
  0xdb   :  { %725 = vmatpush.bf16.msra.mxu0 %v2247_v5  ;;  %v2282_v54 = vor.u32 %v1761_v62, %v1608_v35 }
  0xdc   :  { %704 = vmatmul.bf16.vlgmr.msrb.gmra.mxu2 %v2037_v44 }
  0xdd   :  { %716 = vmatpush.bf16.msrb.mxu3 %v2255_v22  ;;  %787 = vmatpush.bf16.msra.mxu2 %v2146_v1 }
  0xde   :  { %v1814_v42 = vpop.eup %1813  ;;  %v2263_v46 = vld [vmem:[#allocation1 + $0x3] ss:$4 sm:$0xff]  ;;  %690 = vmatpush.bf16.msrb.mxu1 %v2275_v61 }
  0xdf   :  { %362 = vst.sshfl [vmem:[#allocation1 + $0x10] sm:$0xff pattern:$0x73625140] %v2167_v26  ;;  %v401_v55 = vmul.f32 %v1814_v42, %v390_v30  ;;  %726 = vmatpush.bf16.msra.mxu0 %v2259_v34 }
  0xe0   :  { %360 = vst.sshfl [vmem:[#allocation1] sm:$0xff pattern:$0x73625140] %v2133_v52  ;;  %v1816_v58 = vpop.eup %1815  ;;  %717 = vmatmul.bf16.vlgmr.msrb.gmra.mxu3 %v2037_v44 }
  0xe1   :  { %361 = vst.sshfl [vmem:[#allocation1 + $0x8] sm:$0xff pattern:$0x73625140] %v2131_v50  ;;  %v402_v43 = vadd.f32 %v401_v55, %v400_v0  ;;  %800 = vmatpush.bf16.msra.mxu3 %v2149_v4  ;;  %v398_v63 = vmul.f32 0.5, %v1816_v58  ;;  %788 = vmatpush.bf16.msra.mxu2 %v2159_v15 }
  0xe2   :  { %363 = vst.sshfl [vmem:[#allocation1 + $0x18] sm:$0xff pattern:$0x73625140] %v2169_v27  ;;  %774 = vmatpush.bf16.msra.mxu1 %v2172_v28 }
  0xe3   :  { %1817 = vtanh.f32 %v402_v43  ;;  %727 = vmatpush.bf16.msra.mxu0 %v2273_v60  ;;  %v399_v9 = vadd.f32 0.5, %v398_v63  ;;  %691 = vmatmul.bf16.vlgmr.msrb.gmra.mxu1 %v2037_v44 }
  0xe5   :  { %801 = vmatpush.bf16.msra.mxu3 %v2164_v20  ;;  %789 = vmatpush.bf16.msra.mxu2 %v2174_v33 }
  0xe6   :  { %775 = vmatpush.bf16.msra.mxu1 %v2190_v48 }
  0xe7   :  { %728 = vmatpush.bf16.msra.mxu0 %v2282_v54 }
  0xe9   :  { %v1818_v10 = vpop.eup %1817  ;;  %v2287_v14 = vld [vmem:[#allocation1 + $0x1] ss:$4 sm:$0xff]  ;;  %802 = vmatpush.bf16.msra.mxu3 %v2181_v40  ;;  %790 = vmatpush.bf16.msra.mxu2 %v2199_v59 }
  0xea   :  { %372 = vst.sshfl [vmem:[#allocation1 + $0x18] sm:$0xff pattern:$0x73625140] %v2169_v27  ;;  %v404_v21 = vmul.f32 %v1818_v10, %v399_v9  ;;  %776 = vmatpush.bf16.msra.mxu1 %v2206_v7 }
  0xeb   :  { %369 = vst.sshfl [vmem:[#allocation1] sm:$0xff pattern:$0x73625140] %v2133_v52  ;;  %729 = vmatpush.bf16.msra.mxu0 %v2290_v16 }
  0xec   :  { %370 = vst.sshfl [vmem:[#allocation1 + $0x8] sm:$0xff pattern:$0x73625140] %v2131_v50  ;;  %v421_v23 = vpack.c.bf16 %v404_v21, %v404_v21 }
  0xed   :  { %371 = vst.sshfl [vmem:[#allocation1 + $0x10] sm:$0xff pattern:$0x73625140] %v2167_v26  ;;  %803 = vmatpush.bf16.msra.mxu3 %v2201_v2  ;;  %791 = vmatpush.bf16.msra.mxu2 %v2209_v11 }
  0xee   :  { %v427_v25 = vrot.slane %v421_v23, 3  ;;  %777 = vmatpush.bf16.msra.mxu1 %v2217_v24 }
  0xf0   :  { %485 = vmatmul.bf16.vlgmr.msrb.gmra.mxu0 %v427_v25 }
  0xf1   :  { %813 = vmatpush.bf16.msrb.mxu0 %v2204_v6  ;;  %804 = vmatpush.bf16.msra.mxu3 %v2213_v17 }
  0xf2   :  { %792 = vmatpush.bf16.msra.mxu2 %v2222_v32  ;;  %778 = vmatpush.bf16.msra.mxu1 %v2236_v57 }
  0xf4   :  { %v2307_v29 = vld [vmem:[#allocation1 + $0x2] ss:$4 sm:$0xff] }
  0xf5   :  { %814 = vmatpush.bf16.msrb.mxu0 %v2215_v18  ;;  %378 = vst.sshfl [vmem:[#allocation1] sm:$0xff pattern:$0x73625140] %v2133_v52  ;;  %805 = vmatpush.bf16.msra.mxu3 %v2226_v41 }
  0xf6   :  { %379 = vst.sshfl [vmem:[#allocation1 + $0x8] sm:$0xff pattern:$0x73625140] %v2131_v50  ;;  %793 = vmatpush.bf16.msra.mxu2 %v2241_v56  ;;  %779 = vmatpush.bf16.msra.mxu1 %v2250_v12 }
  0xf7   :  { %380 = vst.sshfl [vmem:[#allocation1 + $0x10] sm:$0xff pattern:$0x73625140] %v2167_v26 }
  0xf8   :  { %381 = vst.sshfl [vmem:[#allocation1 + $0x18] sm:$0xff pattern:$0x73625140] %v2169_v27 }
  0xf9   :  { %815 = vmatpush.bf16.msrb.mxu0 %v2231_v49  ;;  %806 = vmatpush.bf16.msra.mxu3 %v2245_v45 }
  0xfa   :  { %794 = vmatpush.bf16.msra.mxu2 %v2252_v13  ;;  %780 = vmatpush.bf16.msra.mxu1 %v2261_v36 }
  0xfd   :  { %816 = vmatpush.bf16.msrb.mxu0 %v2247_v5  ;;  %807 = vmatpush.bf16.msra.mxu3 %v2255_v22 }
  0xfe   :  { %878 = vmatpush.bf16.msrb.mxu2 %v2146_v1  ;;  %781 = vmatpush.bf16.msra.mxu1 %v2275_v61 }
 0x100   :  { %730 = vmatmul.bf16.vlgmr.msra.gmra.mxu0 %v2037_v44 }
 0x101   :  { %891 = vmatpush.bf16.msrb.mxu3 %v2149_v4  ;;  %817 = vmatpush.bf16.msrb.mxu0 %v2259_v34 }
 0x102   :  { %879 = vmatpush.bf16.msrb.mxu2 %v2159_v15  ;;  %865 = vmatpush.bf16.msrb.mxu1 %v2172_v28 }
 0x105   :  { %892 = vmatpush.bf16.msrb.mxu3 %v2164_v20  ;;  %818 = vmatpush.bf16.msrb.mxu0 %v2273_v60 }
 0x106   :  { %880 = vmatpush.bf16.msrb.mxu2 %v2174_v33  ;;  %866 = vmatpush.bf16.msrb.mxu1 %v2190_v48 }
 0x109   :  { %893 = vmatpush.bf16.msrb.mxu3 %v2181_v40  ;;  %819 = vmatpush.bf16.msrb.mxu0 %v2282_v54 }
 0x10a   :  { %881 = vmatpush.bf16.msrb.mxu2 %v2199_v59  ;;  %867 = vmatpush.bf16.msrb.mxu1 %v2206_v7 }
 0x10d   :  { %894 = vmatpush.bf16.msrb.mxu3 %v2201_v2  ;;  %820 = vmatpush.bf16.msrb.mxu0 %v2290_v16 }
 0x10e   :  { %882 = vmatpush.bf16.msrb.mxu2 %v2209_v11  ;;  %868 = vmatpush.bf16.msrb.mxu1 %v2217_v24 }
 0x111   :  { %904 = vmatpush.bf16.msra.mxu0 %v2204_v6  ;;  %895 = vmatpush.bf16.msrb.mxu3 %v2213_v17 }
 0x112   :  { %883 = vmatpush.bf16.msrb.mxu2 %v2222_v32  ;;  %869 = vmatpush.bf16.msrb.mxu1 %v2236_v57 }
 0x115   :  { %905 = vmatpush.bf16.msra.mxu0 %v2215_v18  ;;  %896 = vmatpush.bf16.msrb.mxu3 %v2226_v41 }
 0x116   :  { %884 = vmatpush.bf16.msrb.mxu2 %v2241_v56  ;;  %870 = vmatpush.bf16.msrb.mxu1 %v2250_v12 }
 0x119   :  { %906 = vmatpush.bf16.msra.mxu0 %v2231_v49  ;;  %897 = vmatpush.bf16.msrb.mxu3 %v2245_v45 }
 0x11a   :  { %885 = vmatpush.bf16.msrb.mxu2 %v2252_v13  ;;  %871 = vmatpush.bf16.msrb.mxu1 %v2261_v36 }
 0x11d   :  { %907 = vmatpush.bf16.msra.mxu0 %v2247_v5  ;;  %898 = vmatpush.bf16.msrb.mxu3 %v2255_v22 }
 0x11e   :  { %872 = vmatpush.bf16.msrb.mxu1 %v2275_v61 }
 0x121   :  { %908 = vmatpush.bf16.msra.mxu0 %v2259_v34 }
 0x125   :  { %909 = vmatpush.bf16.msra.mxu0 %v2273_v60 }
 0x129   :  { %910 = vmatpush.bf16.msra.mxu0 %v2282_v54 }
 0x12d   :  { %911 = vmatpush.bf16.msra.mxu0 %v2290_v16 }
 0x15f   :  { %v705_v50 = vpop.f32.mrf.mxu2 }
 0x160   :  { %v692_v52 = vpop.f32.mrf.mxu1  ;;  %v739_v47 = vrot.slane %v705_v50, 6 }
 0x162   :  { %v742_v55 = vsel %vm312_vm1, %v692_v52, %v739_v47 }
 0x163   :  { %v718_v26 = vpop.f32.mrf.mxu3 }
 0x164   :  { %v740_v51 = vrot.slane %v718_v26, 4 }
 0x167   :  { %v707_v30 = vpop.f32.mrf.mxu2 }
 0x168   :  { %v694_v39 = vpop.f32.mrf.mxu1 }
 0x16b   :  { %v720_v38 = vpop.f32.mrf.mxu3 }
 0x16d   :  { %v2361_v27 = vpop.f32.mrf.mxu0 }
 0x175   :  { %v488_v42 = vpop.f32.mrf.mxu0 }
 0x17d   :  { %v731_v0 = vpop.f32.mrf.mxu0 }
 0x17e   :  { %v741_v58 = vrot.slane %v731_v0, 2 }
 0x180   :  { %v743_v43 = vsel %vm314_vm2, %v740_v51, %v741_v58 }
 0x181   :  { %v744_v62 = vsel %vm316_vm3, %v742_v55, %v743_v43 }
 0x182   :  { %v746_v44 = vadd.f32 %v744_v62, %v2162_v19 }
 0x184   :  { %v747_v35 = vmul.f32 0.5, %v746_v44  ;;  %v752_v63 = vrot.slane %v746_v44, 2  ;;  %v761_v9 = vrot.slane %v746_v44, 6  ;;  %v758_v10 = vrot.slane %v746_v44, 4 }
 0x185   :  { %v733_v3 = vpop.f32.mrf.mxu0 }
 0x186   :  { %1819 = vtanh.f32 %v747_v35  ;;  %v754_v8 = vmul.f32 0.5, %v752_v63  ;;  %v763_v21 = vmul.f32 0.5, %v761_v9 }
 0x188   :  { %1821 = vtanh.f32 %v754_v8 }
 0x189   :  { %1823 = vtanh.f32 %v758_v10 }
 0x18a   :  { %1825 = vtanh.f32 %v763_v21 }
 0x18c   :  { %v1820_v23 = vpop.eup %1819 }
 0x18d   :  { %v749_v25 = vmul.f32 0.5, %v1820_v23 }
 0x18e   :  { %v1822_v50 = vpop.eup %1821 }
 0x18f   :  { %v750_v52 = vadd.f32 0.5, %v749_v25  ;;  %v756_v26 = vmul.f32 0.5, %v1822_v50  ;;  %v1824_v38 = vpop.eup %1823 }
 0x190   :  { %v1826_v42 = vpop.eup %1825 }
 0x191   :  { %v757_v30 = vadd.f32 0.5, %v756_v26  ;;  %v768_v19 = vmul.f32 %v1824_v38, %v750_v52  ;;  %v765_v51 = vmul.f32 0.5, %v1826_v42 }
 0x193   :  { %v767_v39 = vmul.f32 0.0, %v757_v30  ;;  %v766_v0 = vadd.f32 0.5, %v765_v51 }
 0x195   :  { %v2367_v47 = vadd.f32 %v768_v19, %v767_v39 }
 0x197   :  { %1827 = vtanh.f32 %v2367_v47 }
 0x19d   :  { %v1828_v55 = vpop.eup %1827 }
 0x19e   :  { %v771_v58 = vmul.f32 %v1828_v55, %v766_v0 }
 0x1a0   :  { %v773_v43 = vpack.c.bf16 %v771_v58, %v771_v58 }
 0x1a2   :  { %782 = vmatmul.bf16.vlgmr.msra.gmra.mxu1 %v773_v43  ;;  %795 = vmatmul.bf16.vlgmr.msra.gmra.mxu2 %v773_v43 }
 0x1a3   :  { %808 = vmatmul.bf16.vlgmr.msra.gmra.mxu3 %v773_v43  ;;  %821 = vmatmul.bf16.vlgmr.msrb.gmra.mxu0 %v773_v43 }
 0x1a4   :  { %956 = vmatpush.bf16.msra.mxu1 %v2172_v28  ;;  %969 = vmatpush.bf16.msra.mxu2 %v2146_v1 }
 0x1a5   :  { %982 = vmatpush.bf16.msra.mxu3 %v2149_v4  ;;  %995 = vmatpush.bf16.msrb.mxu0 %v2204_v6 }
 0x1a8   :  { %957 = vmatpush.bf16.msra.mxu1 %v2190_v48  ;;  %970 = vmatpush.bf16.msra.mxu2 %v2159_v15 }
 0x1a9   :  { %983 = vmatpush.bf16.msra.mxu3 %v2164_v20  ;;  %996 = vmatpush.bf16.msrb.mxu0 %v2215_v18 }
 0x1ac   :  { %958 = vmatpush.bf16.msra.mxu1 %v2206_v7  ;;  %971 = vmatpush.bf16.msra.mxu2 %v2174_v33 }
 0x1ad   :  { %984 = vmatpush.bf16.msra.mxu3 %v2181_v40  ;;  %997 = vmatpush.bf16.msrb.mxu0 %v2231_v49 }
 0x1b0   :  { %959 = vmatpush.bf16.msra.mxu1 %v2217_v24  ;;  %972 = vmatpush.bf16.msra.mxu2 %v2199_v59 }
 0x1b1   :  { %985 = vmatpush.bf16.msra.mxu3 %v2201_v2  ;;  %998 = vmatpush.bf16.msrb.mxu0 %v2247_v5 }
 0x1b4   :  { %960 = vmatpush.bf16.msra.mxu1 %v2236_v57  ;;  %973 = vmatpush.bf16.msra.mxu2 %v2209_v11 }
 0x1b5   :  { %986 = vmatpush.bf16.msra.mxu3 %v2213_v17  ;;  %999 = vmatpush.bf16.msrb.mxu0 %v2259_v34 }
 0x1b8   :  { %961 = vmatpush.bf16.msra.mxu1 %v2250_v12  ;;  %974 = vmatpush.bf16.msra.mxu2 %v2222_v32 }
 0x1b9   :  { %987 = vmatpush.bf16.msra.mxu3 %v2226_v41  ;;  %1000 = vmatpush.bf16.msrb.mxu0 %v2273_v60 }
 0x1bc   :  { %962 = vmatpush.bf16.msra.mxu1 %v2261_v36  ;;  %975 = vmatpush.bf16.msra.mxu2 %v2241_v56 }
 0x1bd   :  { %988 = vmatpush.bf16.msra.mxu3 %v2245_v45  ;;  %1001 = vmatpush.bf16.msrb.mxu0 %v2282_v54 }
 0x1c0   :  { %963 = vmatpush.bf16.msra.mxu1 %v2275_v61  ;;  %976 = vmatpush.bf16.msra.mxu2 %v2252_v13 }
 0x1c1   :  { %989 = vmatpush.bf16.msra.mxu3 %v2255_v22  ;;  %1002 = vmatpush.bf16.msrb.mxu0 %v2290_v16 }
 0x21f   :  { %v783_v62 = vpop.f32.mrf.mxu1 }
 0x220   :  { %v822_v44 = vpop.f32.mrf.mxu0 }
 0x221   :  { %v832_v8 = vrot.slane %v822_v44, 2 }
 0x225   :  { %v796_v35 = vpop.f32.mrf.mxu2 }
 0x226   :  { %v830_v63 = vrot.slane %v796_v35, 6  ;;  %v809_v3 = vpop.f32.mrf.mxu3 }
 0x227   :  { %v831_v9 = vrot.slane %v809_v3, 4  ;;  %v785_v10 = vpop.f32.mrf.mxu1 }
 0x228   :  { %v833_v21 = vsel %vm312_vm1, %v783_v62, %v830_v63  ;;  %v824_v23 = vpop.f32.mrf.mxu0 }
 0x229   :  { %v834_v25 = vsel %vm314_vm2, %v831_v9, %v832_v8 }
 0x22a   :  { %v835_v50 = vsel %vm316_vm3, %v833_v21, %v834_v25 }
 0x22b   :  { %v837_v52 = vadd.f32 %v835_v50, %v2176_v37 }
 0x22d   :  { %v838_v26 = vmul.f32 0.5, %v837_v52  ;;  %v843_v30 = vrot.slane %v837_v52, 2  ;;  %v798_v38 = vpop.f32.mrf.mxu2  ;;  %v852_v42 = vrot.slane %v837_v52, 6  ;;  %v849_v51 = vrot.slane %v837_v52, 4 }
 0x22e   :  { %v811_v39 = vpop.f32.mrf.mxu3 }
 0x22f   :  { %1829 = vtanh.f32 %v838_v26  ;;  %v845_v19 = vmul.f32 0.5, %v843_v30  ;;  %v854_v0 = vmul.f32 0.5, %v852_v42 }
 0x231   :  { %1831 = vtanh.f32 %v845_v19 }
 0x232   :  { %1833 = vtanh.f32 %v849_v51 }
 0x233   :  { %1835 = vtanh.f32 %v854_v0 }
 0x235   :  { %v1830_v55 = vpop.eup %1829 }
 0x236   :  { %v840_v58 = vmul.f32 0.5, %v1830_v55 }
 0x237   :  { %v1832_v43 = vpop.eup %1831 }
 0x238   :  { %v841_v62 = vadd.f32 0.5, %v840_v58  ;;  %v847_v44 = vmul.f32 0.5, %v1832_v43  ;;  %v1834_v63 = vpop.eup %1833 }
 0x239   :  { %v1836_v8 = vpop.eup %1835 }
 0x23a   :  { %v848_v35 = vadd.f32 0.5, %v847_v44  ;;  %v859_v3 = vmul.f32 %v1834_v63, %v841_v62  ;;  %v856_v10 = vmul.f32 0.5, %v1836_v8 }
 0x23c   :  { %v858_v37 = vmul.f32 %v848_v35, %v2367_v47  ;;  %v857_v21 = vadd.f32 0.5, %v856_v10 }
 0x23e   :  { %v2407_v9 = vadd.f32 %v859_v3, %v858_v37 }
 0x240   :  { %1837 = vtanh.f32 %v2407_v9 }
 0x246   :  { %v1838_v23 = vpop.eup %1837 }
 0x247   :  { %v862_v25 = vmul.f32 %v1838_v23, %v857_v21 }
 0x249   :  { %v864_v50 = vpack.c.bf16 %v862_v25, %v862_v25 }
 0x24b   :  { %873 = vmatmul.bf16.vlgmr.msrb.gmra.mxu1 %v864_v50  ;;  %886 = vmatmul.bf16.vlgmr.msrb.gmra.mxu2 %v864_v50 }
 0x24c   :  { %899 = vmatmul.bf16.vlgmr.msrb.gmra.mxu3 %v864_v50  ;;  %912 = vmatmul.bf16.vlgmr.msra.gmra.mxu0 %v864_v50 }
 0x24d   :  { %1047 = vmatpush.bf16.msrb.mxu1 %v2172_v28  ;;  %1060 = vmatpush.bf16.msrb.mxu2 %v2146_v1 }
 0x24e   :  { %1073 = vmatpush.bf16.msrb.mxu3 %v2149_v4  ;;  %1086 = vmatpush.bf16.msra.mxu0 %v2204_v6 }
 0x251   :  { %1048 = vmatpush.bf16.msrb.mxu1 %v2190_v48  ;;  %1061 = vmatpush.bf16.msrb.mxu2 %v2159_v15 }
 0x252   :  { %1074 = vmatpush.bf16.msrb.mxu3 %v2164_v20  ;;  %1087 = vmatpush.bf16.msra.mxu0 %v2215_v18 }
 0x255   :  { %1049 = vmatpush.bf16.msrb.mxu1 %v2206_v7  ;;  %1062 = vmatpush.bf16.msrb.mxu2 %v2174_v33 }
 0x256   :  { %1075 = vmatpush.bf16.msrb.mxu3 %v2181_v40  ;;  %1088 = vmatpush.bf16.msra.mxu0 %v2231_v49 }
 0x259   :  { %1050 = vmatpush.bf16.msrb.mxu1 %v2217_v24  ;;  %1063 = vmatpush.bf16.msrb.mxu2 %v2199_v59 }
 0x25a   :  { %1076 = vmatpush.bf16.msrb.mxu3 %v2201_v2  ;;  %1089 = vmatpush.bf16.msra.mxu0 %v2247_v5 }
 0x25d   :  { %1051 = vmatpush.bf16.msrb.mxu1 %v2236_v57  ;;  %1064 = vmatpush.bf16.msrb.mxu2 %v2209_v11 }
 0x25e   :  { %1077 = vmatpush.bf16.msrb.mxu3 %v2213_v17  ;;  %1090 = vmatpush.bf16.msra.mxu0 %v2259_v34 }
 0x261   :  { %1052 = vmatpush.bf16.msrb.mxu1 %v2250_v12  ;;  %1065 = vmatpush.bf16.msrb.mxu2 %v2222_v32 }
 0x262   :  { %1078 = vmatpush.bf16.msrb.mxu3 %v2226_v41  ;;  %1091 = vmatpush.bf16.msra.mxu0 %v2273_v60 }
 0x265   :  { %1053 = vmatpush.bf16.msrb.mxu1 %v2261_v36  ;;  %1066 = vmatpush.bf16.msrb.mxu2 %v2241_v56 }
 0x266   :  { %1079 = vmatpush.bf16.msrb.mxu3 %v2245_v45  ;;  %1092 = vmatpush.bf16.msra.mxu0 %v2282_v54 }
 0x269   :  { %1054 = vmatpush.bf16.msrb.mxu1 %v2275_v61  ;;  %1067 = vmatpush.bf16.msrb.mxu2 %v2252_v13 }
 0x26a   :  { %1080 = vmatpush.bf16.msrb.mxu3 %v2255_v22  ;;  %1093 = vmatpush.bf16.msra.mxu0 %v2290_v16 }
 0x2c8   :  { %v874_v47 = vpop.f32.mrf.mxu1 }
 0x2c9   :  { %v913_v52 = vpop.f32.mrf.mxu0 }
 0x2ca   :  { %v923_v39 = vrot.slane %v913_v52, 2 }
 0x2ce   :  { %v887_v26 = vpop.f32.mrf.mxu2 }
 0x2cf   :  { %v921_v30 = vrot.slane %v887_v26, 6  ;;  %v900_v38 = vpop.f32.mrf.mxu3 }
 0x2d0   :  { %v922_v19 = vrot.slane %v900_v38, 4  ;;  %v876_v42 = vpop.f32.mrf.mxu1 }
 0x2d1   :  { %v924_v51 = vsel %vm312_vm1, %v874_v47, %v921_v30  ;;  %v915_v0 = vpop.f32.mrf.mxu0 }
 0x2d2   :  { %v925_v55 = vsel %vm314_vm2, %v922_v19, %v923_v39 }
 0x2d3   :  { %v926_v58 = vsel %vm316_vm3, %v924_v51, %v925_v55 }
 0x2d4   :  { %v928_v43 = vadd.f32 %v926_v58, %v2219_v31 }
 0x2d6   :  { %v929_v62 = vmul.f32 0.5, %v928_v43  ;;  %v934_v44 = vrot.slane %v928_v43, 2  ;;  %v889_v35 = vpop.f32.mrf.mxu2  ;;  %v943_v3 = vrot.slane %v928_v43, 6  ;;  %v940_v8 = vrot.slane %v928_v43, 4 }
 0x2d7   :  { %v902_v63 = vpop.f32.mrf.mxu3 }
 0x2d8   :  { %1839 = vtanh.f32 %v929_v62  ;;  %v936_v37 = vmul.f32 0.5, %v934_v44  ;;  %v945_v10 = vmul.f32 0.5, %v943_v3 }
 0x2da   :  { %1841 = vtanh.f32 %v936_v37 }
 0x2db   :  { %1843 = vtanh.f32 %v940_v8 }
 0x2dc   :  { %1845 = vtanh.f32 %v945_v10 }
 0x2de   :  { %v1840_v21 = vpop.eup %1839 }
 0x2df   :  { %v931_v23 = vmul.f32 0.5, %v1840_v21 }
 0x2e0   :  { %v1842_v25 = vpop.eup %1841 }
 0x2e1   :  { %v932_v50 = vadd.f32 0.5, %v931_v23  ;;  %v938_v47 = vmul.f32 0.5, %v1842_v25  ;;  %v1844_v26 = vpop.eup %1843 }
 0x2e2   :  { %v1846_v38 = vpop.eup %1845 }
 0x2e3   :  { %v939_v52 = vadd.f32 0.5, %v938_v47  ;;  %v950_v30 = vmul.f32 %v1844_v26, %v932_v50  ;;  %v947_v19 = vmul.f32 0.5, %v1846_v38 }
 0x2e5   :  { %v949_v31 = vmul.f32 %v939_v52, %v2407_v9  ;;  %v948_v42 = vadd.f32 0.5, %v947_v19 }
 0x2e7   :  { %v2447_v39 = vadd.f32 %v950_v30, %v949_v31 }
 0x2e9   :  { %1847 = vtanh.f32 %v2447_v39 }
 0x2ef   :  { %v1848_v51 = vpop.eup %1847 }
 0x2f0   :  { %v953_v0 = vmul.f32 %v1848_v51, %v948_v42 }
 0x2f2   :  { %v955_v55 = vpack.c.bf16 %v953_v0, %v953_v0 }
 0x2f4   :  { %964 = vmatmul.bf16.vlgmr.msra.gmra.mxu1 %v955_v55  ;;  %977 = vmatmul.bf16.vlgmr.msra.gmra.mxu2 %v955_v55 }
 0x2f5   :  { %990 = vmatmul.bf16.vlgmr.msra.gmra.mxu3 %v955_v55  ;;  %1003 = vmatmul.bf16.vlgmr.msrb.gmra.mxu0 %v955_v55 }
 0x2f6   :  { %1138 = vmatpush.bf16.msra.mxu1 %v2172_v28  ;;  %1151 = vmatpush.bf16.msra.mxu2 %v2146_v1 }
 0x2f7   :  { %1164 = vmatpush.bf16.msra.mxu3 %v2149_v4  ;;  %1177 = vmatpush.bf16.msrb.mxu0 %v2204_v6 }
 0x2fa   :  { %1139 = vmatpush.bf16.msra.mxu1 %v2190_v48  ;;  %1152 = vmatpush.bf16.msra.mxu2 %v2159_v15 }
 0x2fb   :  { %1165 = vmatpush.bf16.msra.mxu3 %v2164_v20  ;;  %1178 = vmatpush.bf16.msrb.mxu0 %v2215_v18 }
 0x2fe   :  { %1140 = vmatpush.bf16.msra.mxu1 %v2206_v7  ;;  %1153 = vmatpush.bf16.msra.mxu2 %v2174_v33 }
 0x2ff   :  { %1166 = vmatpush.bf16.msra.mxu3 %v2181_v40  ;;  %1179 = vmatpush.bf16.msrb.mxu0 %v2231_v49 }
 0x302   :  { %1141 = vmatpush.bf16.msra.mxu1 %v2217_v24  ;;  %1154 = vmatpush.bf16.msra.mxu2 %v2199_v59 }
 0x303   :  { %1167 = vmatpush.bf16.msra.mxu3 %v2201_v2  ;;  %1180 = vmatpush.bf16.msrb.mxu0 %v2247_v5 }
 0x306   :  { %1142 = vmatpush.bf16.msra.mxu1 %v2236_v57  ;;  %1155 = vmatpush.bf16.msra.mxu2 %v2209_v11 }
 0x307   :  { %1168 = vmatpush.bf16.msra.mxu3 %v2213_v17  ;;  %1181 = vmatpush.bf16.msrb.mxu0 %v2259_v34 }
 0x30a   :  { %1143 = vmatpush.bf16.msra.mxu1 %v2250_v12  ;;  %1156 = vmatpush.bf16.msra.mxu2 %v2222_v32 }
 0x30b   :  { %1169 = vmatpush.bf16.msra.mxu3 %v2226_v41  ;;  %1182 = vmatpush.bf16.msrb.mxu0 %v2273_v60 }
 0x30e   :  { %1144 = vmatpush.bf16.msra.mxu1 %v2261_v36  ;;  %1157 = vmatpush.bf16.msra.mxu2 %v2241_v56 }
 0x30f   :  { %1170 = vmatpush.bf16.msra.mxu3 %v2245_v45  ;;  %1183 = vmatpush.bf16.msrb.mxu0 %v2282_v54 }
 0x312   :  { %1145 = vmatpush.bf16.msra.mxu1 %v2275_v61  ;;  %1158 = vmatpush.bf16.msra.mxu2 %v2252_v13 }
 0x313   :  { %1171 = vmatpush.bf16.msra.mxu3 %v2255_v22  ;;  %1184 = vmatpush.bf16.msrb.mxu0 %v2290_v16 }
 0x371   :  { %v965_v9 = vpop.f32.mrf.mxu1 }
 0x372   :  { %v1004_v58 = vpop.f32.mrf.mxu0 }
 0x373   :  { %v1014_v35 = vrot.slane %v1004_v58, 2 }
 0x377   :  { %v978_v43 = vpop.f32.mrf.mxu2 }
 0x378   :  { %v1012_v62 = vrot.slane %v978_v43, 6  ;;  %v991_v44 = vpop.f32.mrf.mxu3 }
 0x379   :  { %v1013_v63 = vrot.slane %v991_v44, 4  ;;  %v967_v37 = vpop.f32.mrf.mxu1 }
 0x37a   :  { %v1015_v3 = vsel %vm312_vm1, %v965_v9, %v1012_v62  ;;  %v1006_v8 = vpop.f32.mrf.mxu0 }
 0x37b   :  { %v1016_v10 = vsel %vm314_vm2, %v1013_v63, %v1014_v35 }
 0x37c   :  { %v1017_v21 = vsel %vm316_vm3, %v1015_v3, %v1016_v10 }
 0x37d   :  { %v1019_v23 = vadd.f32 %v1017_v21, %v2263_v46 }
 0x37f   :  { %v1020_v25 = vmul.f32 0.5, %v1019_v23  ;;  %v1025_v50 = vrot.slane %v1019_v23, 2  ;;  %v980_v47 = vpop.f32.mrf.mxu2  ;;  %v1034_v31 = vrot.slane %v1019_v23, 6  ;;  %v1031_v30 = vrot.slane %v1019_v23, 4 }
 0x380   :  { %v993_v52 = vpop.f32.mrf.mxu3 }
 0x381   :  { %1849 = vtanh.f32 %v1020_v25  ;;  %v1027_v26 = vmul.f32 0.5, %v1025_v50  ;;  %v1036_v38 = vmul.f32 0.5, %v1034_v31 }
 0x383   :  { %1851 = vtanh.f32 %v1027_v26 }
 0x384   :  { %1853 = vtanh.f32 %v1031_v30 }
 0x385   :  { %1855 = vtanh.f32 %v1036_v38 }
 0x387   :  { %v1850_v19 = vpop.eup %1849 }
 0x388   :  { %v1022_v42 = vmul.f32 0.5, %v1850_v19 }
 0x389   :  { %v1852_v51 = vpop.eup %1851 }
 0x38a   :  { %v1023_v0 = vadd.f32 0.5, %v1022_v42  ;;  %v1029_v55 = vmul.f32 0.5, %v1852_v51  ;;  %v1854_v58 = vpop.eup %1853 }
 0x38b   :  { %v1856_v62 = vpop.eup %1855 }
 0x38c   :  { %v1030_v9 = vadd.f32 0.5, %v1029_v55  ;;  %v1041_v43 = vmul.f32 %v1854_v58, %v1023_v0  ;;  %v1038_v35 = vmul.f32 0.5, %v1856_v62 }
 0x38e   :  { %v1040_v46 = vmul.f32 %v1030_v9, %v2447_v39  ;;  %v1039_v63 = vadd.f32 0.5, %v1038_v35 }
 0x390   :  { %v2487_v44 = vadd.f32 %v1041_v43, %v1040_v46 }
 0x392   :  { %1857 = vtanh.f32 %v2487_v44 }
 0x398   :  { %v1858_v37 = vpop.eup %1857 }
 0x399   :  { %v1044_v3 = vmul.f32 %v1858_v37, %v1039_v63 }
 0x39b   :  { %v1046_v8 = vpack.c.bf16 %v1044_v3, %v1044_v3 }
 0x39d   :  { %1055 = vmatmul.bf16.vlgmr.msrb.gmra.mxu1 %v1046_v8  ;;  %1068 = vmatmul.bf16.vlgmr.msrb.gmra.mxu2 %v1046_v8 }
 0x39e   :  { %1081 = vmatmul.bf16.vlgmr.msrb.gmra.mxu3 %v1046_v8  ;;  %1094 = vmatmul.bf16.vlgmr.msra.gmra.mxu0 %v1046_v8 }
 0x39f   :  { %1229 = vmatpush.bf16.msrb.mxu1 %v2172_v28  ;;  %1242 = vmatpush.bf16.msrb.mxu2 %v2146_v1 }
 0x3a0   :  { %1255 = vmatpush.bf16.msrb.mxu3 %v2149_v4  ;;  %1268 = vmatpush.bf16.msra.mxu0 %v2204_v6 }
 0x3a3   :  { %1230 = vmatpush.bf16.msrb.mxu1 %v2190_v48  ;;  %1243 = vmatpush.bf16.msrb.mxu2 %v2159_v15 }
 0x3a4   :  { %1256 = vmatpush.bf16.msrb.mxu3 %v2164_v20  ;;  %1269 = vmatpush.bf16.msra.mxu0 %v2215_v18 }
 0x3a7   :  { %1231 = vmatpush.bf16.msrb.mxu1 %v2206_v7  ;;  %1244 = vmatpush.bf16.msrb.mxu2 %v2174_v33 }
 0x3a8   :  { %1257 = vmatpush.bf16.msrb.mxu3 %v2181_v40  ;;  %1270 = vmatpush.bf16.msra.mxu0 %v2231_v49 }
 0x3ab   :  { %1232 = vmatpush.bf16.msrb.mxu1 %v2217_v24  ;;  %1245 = vmatpush.bf16.msrb.mxu2 %v2199_v59 }
 0x3ac   :  { %1258 = vmatpush.bf16.msrb.mxu3 %v2201_v2  ;;  %1271 = vmatpush.bf16.msra.mxu0 %v2247_v5 }
 0x3af   :  { %1233 = vmatpush.bf16.msrb.mxu1 %v2236_v57  ;;  %1246 = vmatpush.bf16.msrb.mxu2 %v2209_v11 }
 0x3b0   :  { %1259 = vmatpush.bf16.msrb.mxu3 %v2213_v17  ;;  %1272 = vmatpush.bf16.msra.mxu0 %v2259_v34 }
 0x3b3   :  { %1234 = vmatpush.bf16.msrb.mxu1 %v2250_v12  ;;  %1247 = vmatpush.bf16.msrb.mxu2 %v2222_v32 }
 0x3b4   :  { %1260 = vmatpush.bf16.msrb.mxu3 %v2226_v41  ;;  %1273 = vmatpush.bf16.msra.mxu0 %v2273_v60 }
 0x3b7   :  { %1235 = vmatpush.bf16.msrb.mxu1 %v2261_v36  ;;  %1248 = vmatpush.bf16.msrb.mxu2 %v2241_v56 }
 0x3b8   :  { %1261 = vmatpush.bf16.msrb.mxu3 %v2245_v45  ;;  %1274 = vmatpush.bf16.msra.mxu0 %v2282_v54 }
 0x3bb   :  { %1236 = vmatpush.bf16.msrb.mxu1 %v2275_v61  ;;  %1249 = vmatpush.bf16.msrb.mxu2 %v2252_v13 }
 0x3bc   :  { %1262 = vmatpush.bf16.msrb.mxu3 %v2255_v22  ;;  %1275 = vmatpush.bf16.msra.mxu0 %v2290_v16 }
 0x41a   :  { %v1056_v39 = vpop.f32.mrf.mxu1 }
 0x41b   :  { %v1095_v10 = vpop.f32.mrf.mxu0 }
 0x41c   :  { %v1105_v50 = vrot.slane %v1095_v10, 2 }
 0x420   :  { %v1069_v21 = vpop.f32.mrf.mxu2 }
 0x421   :  { %v1103_v23 = vrot.slane %v1069_v21, 6  ;;  %v1082_v25 = vpop.f32.mrf.mxu3 }
 0x422   :  { %v1104_v47 = vrot.slane %v1082_v25, 4  ;;  %v1058_v52 = vpop.f32.mrf.mxu1 }
 0x423   :  { %v1106_v26 = vsel %vm312_vm1, %v1056_v39, %v1103_v23  ;;  %v1097_v31 = vpop.f32.mrf.mxu0 }
 0x424   :  { %v1107_v30 = vsel %vm314_vm2, %v1104_v47, %v1105_v50 }
 0x425   :  { %v1108_v38 = vsel %vm316_vm3, %v1106_v26, %v1107_v30 }
 0x426   :  { %v1110_v19 = vadd.f32 %v1108_v38, %v2194_v53 }
 0x428   :  { %v1111_v42 = vmul.f32 0.5, %v1110_v19  ;;  %v1116_v51 = vrot.slane %v1110_v19, 2  ;;  %v1071_v0 = vpop.f32.mrf.mxu2  ;;  %v1125_v58 = vrot.slane %v1110_v19, 6  ;;  %v1122_v46 = vrot.slane %v1110_v19, 4 }
 0x429   :  { %v1084_v55 = vpop.f32.mrf.mxu3 }
 0x42a   :  { %1859 = vtanh.f32 %v1111_v42  ;;  %v1118_v9 = vmul.f32 0.5, %v1116_v51  ;;  %v1127_v43 = vmul.f32 0.5, %v1125_v58 }
 0x42c   :  { %1861 = vtanh.f32 %v1118_v9 }
 0x42d   :  { %1863 = vtanh.f32 %v1122_v46 }
 0x42e   :  { %1865 = vtanh.f32 %v1127_v43 }
 0x430   :  { %v1860_v62 = vpop.eup %1859 }
 0x431   :  { %v1113_v35 = vmul.f32 0.5, %v1860_v62 }
 0x432   :  { %v1862_v63 = vpop.eup %1861 }
 0x433   :  { %v1114_v37 = vadd.f32 0.5, %v1113_v35  ;;  %v1120_v3 = vmul.f32 0.5, %v1862_v63  ;;  %v1864_v39 = vpop.eup %1863 }
 0x434   :  { %v1866_v21 = vpop.eup %1865 }
 0x435   :  { %v1121_v8 = vadd.f32 0.5, %v1120_v3  ;;  %v1132_v10 = vmul.f32 %v1864_v39, %v1114_v37  ;;  %v1129_v25 = vmul.f32 0.5, %v1866_v21 }
 0x437   :  { %v1131_v53 = vmul.f32 %v1121_v8, %v2487_v44  ;;  %v1130_v50 = vadd.f32 0.5, %v1129_v25 }
 0x439   :  { %v2527_v23 = vadd.f32 %v1132_v10, %v1131_v53 }
 0x43b   :  { %1867 = vtanh.f32 %v2527_v23 }
 0x441   :  { %v1868_v47 = vpop.eup %1867 }
 0x442   :  { %v1135_v52 = vmul.f32 %v1868_v47, %v1130_v50 }
 0x444   :  { %v1137_v26 = vpack.c.bf16 %v1135_v52, %v1135_v52 }
 0x446   :  { %1146 = vmatmul.bf16.vlgmr.msra.gmra.mxu1 %v1137_v26  ;;  %1159 = vmatmul.bf16.vlgmr.msra.gmra.mxu2 %v1137_v26 }
 0x447   :  { %1172 = vmatmul.bf16.vlgmr.msra.gmra.mxu3 %v1137_v26  ;;  %1185 = vmatmul.bf16.vlgmr.msrb.gmra.mxu0 %v1137_v26 }
 0x448   :  { %1320 = vmatpush.bf16.msra.mxu1 %v2172_v28  ;;  %1333 = vmatpush.bf16.msra.mxu2 %v2146_v1 }
 0x449   :  { %1346 = vmatpush.bf16.msra.mxu3 %v2149_v4  ;;  %1359 = vmatpush.bf16.msrb.mxu0 %v2204_v6 }
 0x44c   :  { %1321 = vmatpush.bf16.msra.mxu1 %v2190_v48  ;;  %1334 = vmatpush.bf16.msra.mxu2 %v2159_v15 }
 0x44d   :  { %1347 = vmatpush.bf16.msra.mxu3 %v2164_v20  ;;  %1360 = vmatpush.bf16.msrb.mxu0 %v2215_v18 }
 0x450   :  { %1322 = vmatpush.bf16.msra.mxu1 %v2206_v7  ;;  %1335 = vmatpush.bf16.msra.mxu2 %v2174_v33 }
 0x451   :  { %1348 = vmatpush.bf16.msra.mxu3 %v2181_v40  ;;  %1361 = vmatpush.bf16.msrb.mxu0 %v2231_v49 }
 0x454   :  { %1323 = vmatpush.bf16.msra.mxu1 %v2217_v24  ;;  %1336 = vmatpush.bf16.msra.mxu2 %v2199_v59 }
 0x455   :  { %1349 = vmatpush.bf16.msra.mxu3 %v2201_v2  ;;  %1362 = vmatpush.bf16.msrb.mxu0 %v2247_v5 }
 0x458   :  { %1324 = vmatpush.bf16.msra.mxu1 %v2236_v57  ;;  %1337 = vmatpush.bf16.msra.mxu2 %v2209_v11 }
 0x459   :  { %1350 = vmatpush.bf16.msra.mxu3 %v2213_v17  ;;  %1363 = vmatpush.bf16.msrb.mxu0 %v2259_v34 }
 0x45c   :  { %1325 = vmatpush.bf16.msra.mxu1 %v2250_v12  ;;  %1338 = vmatpush.bf16.msra.mxu2 %v2222_v32 }
 0x45d   :  { %1351 = vmatpush.bf16.msra.mxu3 %v2226_v41  ;;  %1364 = vmatpush.bf16.msrb.mxu0 %v2273_v60 }
 0x460   :  { %1326 = vmatpush.bf16.msra.mxu1 %v2261_v36  ;;  %1339 = vmatpush.bf16.msra.mxu2 %v2241_v56 }
 0x461   :  { %1352 = vmatpush.bf16.msra.mxu3 %v2245_v45  ;;  %1365 = vmatpush.bf16.msrb.mxu0 %v2282_v54 }
 0x464   :  { %1327 = vmatpush.bf16.msra.mxu1 %v2275_v61  ;;  %1340 = vmatpush.bf16.msra.mxu2 %v2252_v13 }
 0x465   :  { %1353 = vmatpush.bf16.msra.mxu3 %v2255_v22  ;;  %1366 = vmatpush.bf16.msrb.mxu0 %v2290_v16 }
 0x4c3   :  { %v1147_v1 = vpop.f32.mrf.mxu1 }
 0x4c4   :  { %v1186_v4 = vpop.f32.mrf.mxu0 }
 0x4c5   :  { %v1196_v33 = vrot.slane %v1186_v4, 2 }
 0x4c9   :  { %v1160_v15 = vpop.f32.mrf.mxu2 }
 0x4ca   :  { %v1194_v20 = vrot.slane %v1160_v15, 6  ;;  %v1173_v28 = vpop.f32.mrf.mxu3 }
 0x4cb   :  { %v1195_v40 = vrot.slane %v1173_v28, 4  ;;  %v1149_v48 = vpop.f32.mrf.mxu1 }
 0x4cc   :  { %v1197_v59 = vsel %vm312_vm1, %v1147_v1, %v1194_v20  ;;  %v1188_v2 = vpop.f32.mrf.mxu0 }
 0x4cd   :  { %v1198_v6 = vsel %vm314_vm2, %v1195_v40, %v1196_v33 }
 0x4ce   :  { %v1199_v7 = vsel %vm316_vm3, %v1197_v59, %v1198_v6 }
 0x4cf   :  { %v1201_v11 = vadd.f32 %v1199_v7, %v2287_v14  ;;  %v1795_v7 = vld [vmem:[#allocation8 + $0x38] sm:$0xff] }
 0x4d1   :  { %v1202_v17 = vmul.f32 0.5, %v1201_v11  ;;  %v1207_v18 = vrot.slane %v1201_v11, 2  ;;  %v1162_v24 = vpop.f32.mrf.mxu2  ;;  %v1216_v49 = vrot.slane %v1201_v11, 6  ;;  %v1213_v57 = vrot.slane %v1201_v11, 4  ;;  %v1794_v11 = vld [vmem:[#allocation8 + $0x30] sm:$0xff] }
 0x4d2   :  { %v1175_v32 = vpop.f32.mrf.mxu3 }
 0x4d3   :  { %1869 = vtanh.f32 %v1202_v17  ;;  %v1209_v41 = vmul.f32 0.5, %v1207_v18  ;;  %v1218_v56 = vmul.f32 0.5, %v1216_v49  ;;  %v1793_v17 = vld [vmem:[#allocation8 + $0x28] sm:$0xff]  ;;  %v1792_v18 = vld [vmem:[#allocation8 + $0x20] sm:$0xff] }
 0x4d5   :  { %1871 = vtanh.f32 %v1209_v41  ;;  %v1791_v41 = vld [vmem:[#allocation8 + $0x18] sm:$0xff] }
 0x4d6   :  { %1873 = vtanh.f32 %v1213_v57  ;;  %v1790_v57 = vld [vmem:[#allocation8 + $0x10] sm:$0xff] }
 0x4d7   :  { %1875 = vtanh.f32 %v1218_v56 }
 0x4d9   :  { %v1870_v45 = vpop.eup %1869 }
 0x4da   :  { %v1204_v5 = vmul.f32 0.5, %v1870_v45 }
 0x4db   :  { %v1872_v12 = vpop.eup %1871 }
 0x4dc   :  { %v1205_v13 = vadd.f32 0.5, %v1204_v5  ;;  %v1211_v22 = vmul.f32 0.5, %v1872_v12  ;;  %v1874_v36 = vpop.eup %1873 }
 0x4dd   :  { %v1876_v54 = vpop.eup %1875 }
 0x4de   :  { %v1212_v34 = vadd.f32 0.5, %v1211_v22  ;;  %v1223_v61 = vmul.f32 %v1874_v36, %v1205_v13  ;;  %v1220_v16 = vmul.f32 0.5, %v1876_v54 }
 0x4e0   :  { %v1222_v60 = vmul.f32 %v1212_v34, %v2527_v23  ;;  %v1221_v44 = vadd.f32 0.5, %v1220_v16 }
 0x4e2   :  { %v1224_v14 = vadd.f32 %v1223_v61, %v1222_v60  ;;  %v1789_v60 = vld [vmem:[#allocation8 + $0x8] sm:$0xff] }
 0x4e3   :  { %v383_v61 = vld [vmem:[#allocation1 + $0x3] ss:$4 sm:$0xff] }
 0x4e4   :  { %1877 = vtanh.f32 %v1224_v14 }
 0x4ea   :  { %v1878_v31 = vpop.eup %1877 }
 0x4eb   :  { %v1226_v30 = vmul.f32 %v1878_v31, %v1221_v44 }
 0x4ed   :  { %v1228_v38 = vpack.c.bf16 %v1226_v30, %v1226_v30  ;;  %v1788_v30 = vld [vmem:[#allocation8] sm:$0xff] }
 0x4ef   :  { %1237 = vmatmul.bf16.vlgmr.msrb.gmra.mxu1 %v1228_v38  ;;  %1250 = vmatmul.bf16.vlgmr.msrb.gmra.mxu2 %v1228_v38 }
 0x4f0   :  { %1263 = vmatmul.bf16.vlgmr.msrb.gmra.mxu3 %v1228_v38  ;;  %1276 = vmatmul.bf16.vlgmr.msra.gmra.mxu0 %v1228_v38 }
 0x4f1   :  { %1474 = vmatpush.bf16.msrb.mxu1 %v1795_v7 }
 0x4f5   :  { %1475 = vmatpush.bf16.msrb.mxu1 %v1794_v11 }
 0x4f9   :  { %1476 = vmatpush.bf16.msrb.mxu1 %v1793_v17 }
 0x4fd   :  { %1477 = vmatpush.bf16.msrb.mxu1 %v1792_v18 }
 0x501   :  { %1478 = vmatpush.bf16.msrb.mxu1 %v1791_v41 }
 0x505   :  { %1479 = vmatpush.bf16.msrb.mxu1 %v1790_v57 }
 0x509   :  { %1480 = vmatpush.bf16.msrb.mxu1 %v1789_v60 }
 0x50d   :  { %1481 = vmatpush.bf16.msrb.mxu1 %v1788_v30 }
 0x56c   :  { %v1238_v19 = vpop.f32.mrf.mxu1 }
 0x56d   :  { %v1277_v42 = vpop.f32.mrf.mxu0 }
 0x56e   :  { %v1287_v9 = vrot.slane %v1277_v42, 2 }
 0x572   :  { %v1251_v51 = vpop.f32.mrf.mxu2 }
 0x573   :  { %v1285_v0 = vrot.slane %v1251_v51, 6  ;;  %v1264_v55 = vpop.f32.mrf.mxu3 }
 0x574   :  { %v1286_v58 = vrot.slane %v1264_v55, 4  ;;  %v1240_v46 = vpop.f32.mrf.mxu1 }
 0x575   :  { %v1288_v43 = vsel %vm312_vm1, %v1238_v19, %v1285_v0  ;;  %v1279_v62 = vpop.f32.mrf.mxu0 }
 0x576   :  { %v1289_v35 = vsel %vm314_vm2, %v1286_v58, %v1287_v9 }
 0x577   :  { %v1290_v63 = vsel %vm316_vm3, %v1288_v43, %v1289_v35 }
 0x578   :  { %v1292_v37 = vadd.f32 %v1290_v63, %v2307_v29 }
 0x57a   :  { %v1293_v3 = vmul.f32 0.5, %v1292_v37  ;;  %v1298_v8 = vrot.slane %v1292_v37, 2  ;;  %v1253_v39 = vpop.f32.mrf.mxu2  ;;  %v1307_v21 = vrot.slane %v1292_v37, 6  ;;  %v1304_v23 = vrot.slane %v1292_v37, 4 }
 0x57b   :  { %v1266_v53 = vpop.f32.mrf.mxu3 }
 0x57c   :  { %1879 = vtanh.f32 %v1293_v3  ;;  %v1300_v10 = vmul.f32 0.5, %v1298_v8  ;;  %v1309_v25 = vmul.f32 0.5, %v1307_v21 }
 0x57e   :  { %1881 = vtanh.f32 %v1300_v10 }
 0x57f   :  { %1883 = vtanh.f32 %v1304_v23 }
 0x580   :  { %1885 = vtanh.f32 %v1309_v25  ;;  %v1808_v25 = vld [vmem:[%s2587_s6] ss:$0 sm:$0xff] }
 0x582   :  { %v1880_v50 = vpop.eup %1879 }
 0x583   :  { %v1295_v47 = vmul.f32 0.5, %v1880_v50  ;;  %v487_v50 = vadd.f32 %v1808_v25, %v2361_v27 }
 0x584   :  { %v1882_v52 = vpop.eup %1881 }
 0x585   :  { %v1296_v26 = vadd.f32 0.5, %v1295_v47  ;;  %v1302_v1 = vmul.f32 0.5, %v1882_v52  ;;  %v1884_v15 = vpop.eup %1883 }
 0x586   :  { %v1886_v28 = vpop.eup %1885 }
 0x587   :  { %v1303_v4 = vadd.f32 0.5, %v1302_v1  ;;  %v1314_v20 = vmul.f32 %v1884_v15, %v1296_v26  ;;  %v1311_v40 = vmul.f32 0.5, %v1886_v28 }
 0x589   :  { %v1313_v29 = vmul.f32 %v1303_v4, %v1224_v14  ;;  %v1312_v48 = vadd.f32 0.5, %v1311_v40 }
 0x58b   :  { %v1315_v33 = vadd.f32 %v1314_v20, %v1313_v29 }
 0x58d   :  { %1887 = vtanh.f32 %v1315_v33 }
 0x593   :  { %v1888_v59 = vpop.eup %1887 }
 0x594   :  { %v1317_v2 = vmul.f32 %v1888_v59, %v1312_v48 }
 0x596   :  { %v1319_v6 = vpack.c.bf16 %v1317_v2, %v1317_v2 }
 0x598   :  { %1328 = vmatmul.bf16.vlgmr.msra.gmra.mxu1 %v1319_v6  ;;  %1341 = vmatmul.bf16.vlgmr.msra.gmra.mxu2 %v1319_v6 }
 0x599   :  { %1354 = vmatmul.bf16.vlgmr.msra.gmra.mxu3 %v1319_v6  ;;  %1367 = vmatmul.bf16.vlgmr.msrb.gmra.mxu0 %v1319_v6 }
 0x615   :  { %v1329_v24 = vpop.f32.mrf.mxu1 }
 0x616   :  { %v1368_v32 = vpop.f32.mrf.mxu0 }
 0x617   :  { %v1378_v5 = vrot.slane %v1368_v32, 2 }
 0x61b   :  { %v1342_v49 = vpop.f32.mrf.mxu2 }
 0x61c   :  { %v1376_v56 = vrot.slane %v1342_v49, 6  ;;  %v1355_v45 = vpop.f32.mrf.mxu3 }
 0x61d   :  { %v1377_v12 = vrot.slane %v1355_v45, 4  ;;  %v1331_v13 = vpop.f32.mrf.mxu1 }
 0x61e   :  { %v1379_v22 = vsel %vm312_vm1, %v1329_v24, %v1376_v56  ;;  %v1370_v34 = vpop.f32.mrf.mxu0 }
 0x61f   :  { %v1380_v36 = vsel %vm314_vm2, %v1377_v12, %v1378_v5 }
 0x620   :  { %v1381_v54 = vsel %vm316_vm3, %v1379_v22, %v1380_v36 }
 0x621   :  { %v1383_v14 = vadd.f32 %v1381_v54, %v383_v61 }
 0x623   :  { %v1384_v16 = vmul.f32 0.5, %v1383_v14  ;;  %v1389_v44 = vrot.slane %v1383_v14, 2  ;;  %v1344_v31 = vpop.f32.mrf.mxu2  ;;  %v1398_v42 = vrot.slane %v1383_v14, 6  ;;  %v1395_v51 = vrot.slane %v1383_v14, 4 }
 0x624   :  { %v1357_v38 = vpop.f32.mrf.mxu3 }
 0x625   :  { %1889 = vtanh.f32 %v1384_v16  ;;  %v1391_v19 = vmul.f32 0.5, %v1389_v44  ;;  %v1400_v0 = vmul.f32 0.5, %v1398_v42 }
 0x627   :  { %1891 = vtanh.f32 %v1391_v19 }
 0x628   :  { %1893 = vtanh.f32 %v1395_v51 }
 0x629   :  { %1895 = vtanh.f32 %v1400_v0 }
 0x62b   :  { %v1890_v55 = vpop.eup %1889 }
 0x62c   :  { %v1386_v9 = vmul.f32 0.5, %v1890_v55 }
 0x62d   :  { %v1892_v58 = vpop.eup %1891 }
 0x62e   :  { %v1387_v46 = vadd.f32 0.5, %v1386_v9  ;;  %v1393_v43 = vmul.f32 0.5, %v1892_v58  ;;  %v1894_v35 = vpop.eup %1893 }
 0x62f   :  { %v1896_v3 = vpop.eup %1895 }
 0x630   :  { %v1394_v62 = vadd.f32 0.5, %v1393_v43  ;;  %v1405_v37 = vmul.f32 %v1894_v35, %v1387_v46  ;;  %v1402_v39 = vmul.f32 0.5, %v1896_v3 }
 0x632   :  { %v1404_v63 = vmul.f32 %v1394_v62, %v1315_v33  ;;  %v1403_v53 = vadd.f32 0.5, %v1402_v39 }
 0x634   :  { %v1406_v8 = vadd.f32 %v1405_v37, %v1404_v63 }
 0x636   :  { %1897 = vtanh.f32 %v1406_v8 }
 0x63c   :  { %v1898_v10 = vpop.eup %1897 }
 0x63d   :  { %v1408_v21 = vmul.f32 %v1898_v10, %v1403_v53 }
 0x63f   :  { %v1425_v23 = vpack.c.bf16 %v1408_v21, %v1408_v21 }
 0x641   :  { %1482 = vmatmul.bf16.vlgmr.msrb.gmra.mxu1 %v1425_v23 }
 0x6be   :  { %v1483_v47 = vpop.f32.mrf.mxu1 }
 0x6bf   :  { %v1487_v52 = vadd.f32 %v1483_v47, %v487_v50 }
 0x6c1   :  { %1488 = vst [vmem:[#allocation11] sm:$0x3] %v1487_v52 }
 0x6c2   :  { %1499 = dma.vmem_to_hbm [thread:$0]  %s1495_s18, 32, %s1497_s20, [#allocation5]  }
 0x6c6   :  { %v1485_v26 = vpop.f32.mrf.mxu1 }
 0x6c7   :  { %2025 = dma.done.wait [#allocation5], 32  }
 0x6c8   :  { %2026 = vsyncadd [#allocation5], 4294967264 }
 0x6c9   :  { %1504 = vsyncpa [#allocation4], 1 }
 0x6ca   :  { %1505 = vsyncpa [#allocation7], 1 }
 0x6cb   :  { %1506 = vsyncpa [#allocation10], 1 }
 0x6cc   :  { %1507 = vsyncpa [#allocation5], 1 }

</bundles_post_ra>
